<compile_context>
chip_gen: v7x
topology: tpu7x:2x2x1
jax: 0.10.0
libtpu: 0.0.40
codegen_flags: <defaults>
</compile_context>

<pallas_src>
import functools

import jax
import jax.numpy as jnp
from jax.experimental import pallas as pl
from jax.experimental.pallas import tpu as pltpu


def _round_up(x, m):
    return (x + m - 1) // m * m


def _char_decoder_kernel(L, Hp,
                         gx_ref, whh_ref, wout_ref, bout_ref, h0_ref, c0_ref,
                         s_ref, hN_ref, cN_ref,
                         hs_sc):
    """Whole-sequence LSTM recurrence + deferred vocab projection.

    Padded shapes:
      gx_ref:   (L, Bp, 4*Hp)  precomputed input-gate contributions
                               (= emb[ids] @ W_ih + bias, i/f/o cols * 0.5)
      whh_ref:  (Hp, 4*Hp)     recurrent weights (i/f/o cols * 0.5)
      wout_ref: (Hp, Vp)       output projection
      bout_ref: (1, Vp)
      h0/c0:    (Bp, Hp)
      s_ref:    (L, Bp, Vp)    hN/cN: (Bp, Hp)
      hs_sc:    (L, Bp, Hp)    VMEM scratch holding every h_t
    """
    Bp = hs_sc.shape[1]
    Vp = s_ref.shape[2]
    mm_dtype = whh_ref.dtype

    def step(t, carry):
        h, c = carry
        # Only the h@W_hh matmul is on the serial h->h chain; the input
        # contribution is a precomputed slab.  Weights are read straight from
        # the VMEM ref at the dot site (no long-lived 256 KiB vreg values).
        gates = gx_ref[t] + jnp.dot(
            h.astype(mm_dtype), whh_ref[...],
            preferred_element_type=jnp.float32)                    # (Bp, 4*Hp)
        # sigmoid(z) = 0.5*tanh(z/2) + 0.5 ; the /2 is folded into the i/f/o
        # weight columns at prep time -> one tanh sweep over the whole tile.
        t_all = jnp.tanh(gates)
        i_g = 0.5 * t_all[:, 0 * Hp:1 * Hp] + 0.5
        f_g = 0.5 * t_all[:, 1 * Hp:2 * Hp] + 0.5
        g_g = t_all[:, 2 * Hp:3 * Hp]
        o_g = 0.5 * t_all[:, 3 * Hp:4 * Hp] + 0.5
        c_new = f_g * c + i_g * g_g
        h_new = o_g * jnp.tanh(c_new)
        hs_sc[t] = h_new                      # stash for deferred projection
        return h_new, c_new

    h_fin, c_fin = jax.lax.fori_loop(
        0, L, step, (h0_ref[...], c0_ref[...]),
        unroll=(L if L <= 16 else 8))         # partial unroll for long L

    # Final LSTM state: written exactly once.
    hN_ref[...] = h_fin
    cN_ref[...] = c_fin

    # Deferred vocab projection: one batched matmul, lane-dense Vp output.
    hs = hs_sc[...].reshape(L * Bp, Hp)                             # (L*Bp, Hp)
    scores = (jnp.dot(hs.astype(mm_dtype), wout_ref[...],
                      preferred_element_type=jnp.float32)
              + bout_ref[...])                                      # (L*Bp, Vp)
    s_ref[...] = scores.reshape(L, Bp, Vp).astype(s_ref.dtype)


def prepare_params(params, matmul_dtype=jnp.float32):
    """One-time parameter prep (NOT per forward call).

    Fuses embedding + input projection + bias into a (V, 4*Hp) gates table,
    folds the 0.5 sigmoid-as-tanh scale into the i/f/o gate columns, and pads
    every matmul operand lane/sublane-dense.  matmul_dtype controls the MXU
    operand dtype for W_hh / W_out (bf16 recommended on v6e/v7x at scale).
    """
    emb = params["embedding"].astype(jnp.float32)   # (V, E)
    W_ih = params["W_ih"].astype(jnp.float32)       # (E, 4H)
    W_hh = params["W_hh"].astype(jnp.float32)       # (H, 4H)
    b = params["b"].astype(jnp.float32)             # (1, 4H) = b_ih + b_hh
    W_out = params["W_out"].astype(jnp.float32)     # (H, V)
    b_out = params["b_out"].astype(jnp.float32)     # (1, V)

    V, E = emb.shape
    H = W_hh.shape[0]
    Hp = _round_up(H, 128)
    Vp = _round_up(V, 128)

    # 0.5 scale for i/f/o (sigmoid-via-tanh), 1.0 for g (plain tanh).
    gate_scale = jnp.array([0.5, 0.5, 1.0, 0.5], jnp.float32)[None, :, None]

    # Fused input table: one (V,E)@(E,4H) matmul at prep time.
    tab = (emb @ W_ih + b).reshape(V, 4, H) * gate_scale            # (V,4,H)
    tab_p = jnp.zeros((V, 4, Hp), jnp.float32).at[:, :, :H].set(tab)
    gates_table = tab_p.reshape(V, 4 * Hp)                          # (V, 4*Hp)

    whh = W_hh.reshape(H, 4, H) * gate_scale
    whh_p = jnp.zeros((Hp, 4, Hp), jnp.float32).at[:H, :, :H].set(whh)
    W_hh_p = whh_p.reshape(Hp, 4 * Hp).astype(matmul_dtype)

    W_out_p = jnp.zeros((Hp, Vp), jnp.float32).at[:H, :V].set(W_out)
    W_out_p = W_out_p.astype(matmul_dtype)
    b_out_p = jnp.zeros((1, Vp), jnp.float32).at[:, :V].set(b_out)

    return {
        "gates_table": gates_table,
        "W_hh_p": W_hh_p,
        "W_out_p": W_out_p,
        "b_out_p": b_out_p,
        "H": H, "V": V, "Hp": Hp, "Vp": Vp,
    }


def char_decoder_forward(input_ids, prep, dec_hidden=None):
    """Pallas equivalent of CharDecoder.forward.

    input_ids: (L, B) int32
    prep: output of prepare_params (padded/fused weights, built once)
    dec_hidden: optional tuple of (1, B, H) tensors
    returns: scores (L, B, V) f32, (h_n, c_n) each (1, B, H) f32
    """
    L, B = input_ids.shape
    H, V, Hp, Vp = prep["H"], prep["V"], prep["Hp"], prep["Vp"]
    Bp = _round_up(max(B, 8), 8)

    # Per-token input contribution = row gather of the fused gates table.
    # TODO(synk): could move in-kernel via scalar-prefetched ids; negligible at
    # these shapes since the table is tiny.
    gx = jnp.take(prep["gates_table"], input_ids, axis=0)          # (L,B,4Hp)
    gx_p = jnp.zeros((L, Bp, 4 * Hp), jnp.float32).at[:, :B, :].set(gx)

    if dec_hidden is None:
        h0 = jnp.zeros((B, H), jnp.float32)
        c0 = jnp.zeros((B, H), jnp.float32)
    else:
        h0 = dec_hidden[0].reshape(B, H).astype(jnp.float32)
        c0 = dec_hidden[1].reshape(B, H).astype(jnp.float32)
    h0_p = jnp.zeros((Bp, Hp), jnp.float32).at[:B, :H].set(h0)
    c0_p = jnp.zeros((Bp, Hp), jnp.float32).at[:B, :H].set(c0)

    kernel = functools.partial(_char_decoder_kernel, L, Hp)

    def fullspec(shape):
        nd = len(shape)
        return pl.BlockSpec(shape, lambda i, _nd=nd: (0,) * _nd)

    grid_spec = pltpu.PrefetchScalarGridSpec(
        num_scalar_prefetch=0,
        grid=(1,),   # single invocation; the recurrence loops in-kernel
        in_specs=[
            fullspec((L, Bp, 4 * Hp)),      # gx (fused emb@W_ih + bias)
            fullspec((Hp, 4 * Hp)),         # W_hh
            fullspec((Hp, Vp)),             # W_out
            fullspec((1, Vp)),              # b_out
            fullspec((Bp, Hp)),             # h0
            fullspec((Bp, Hp)),             # c0
        ],
        out_specs=[
            fullspec((L, Bp, Vp)),          # scores (lane-dense Vp=128)
            fullspec((Bp, Hp)),             # h_n
            fullspec((Bp, Hp)),             # c_n
        ],
        scratch_shapes=[
            pltpu.VMEM((L, Bp, Hp), jnp.float32),   # all h_t, for deferred proj
        ],
    )

    s_p, h_p, c_p = pl.pallas_call(
        kernel,
        grid_spec=grid_spec,
        out_shape=(
            jax.ShapeDtypeStruct((L, Bp, Vp), jnp.float32),
            jax.ShapeDtypeStruct((Bp, Hp), jnp.float32),
            jax.ShapeDtypeStruct((Bp, Hp), jnp.float32),
        ),
        compiler_params=pltpu.CompilerParams(
            dimension_semantics=("arbitrary",)),
    )(gx_p, prep["W_hh_p"], prep["W_out_p"], prep["b_out_p"], h0_p, c0_p)

    scores = s_p[:, :B, :V]
    h_n = h_p[:B, :H][None]
    c_n = c_p[:B, :H][None]
    return scores, (h_n, c_n)


def reference_forward(input_ids, params, dec_hidden):
    """Pure-JAX reference (lax.scan, unfused math) for correctness checking."""
    H = params["W_hh"].shape[0]
    x = jnp.take(params["embedding"], input_ids, axis=0)
    h, c = dec_hidden[0][0], dec_hidden[1][0]

    def step(carry, x_t):
        h, c = carry
        gates = x_t @ params["W_ih"] + h @ params["W_hh"] + params["b"][0]
        i = jax.nn.sigmoid(gates[:, 0 * H:1 * H])
        f = jax.nn.sigmoid(gates[:, 1 * H:2 * H])
        g = jnp.tanh(gates[:, 2 * H:3 * H])
        o = jax.nn.sigmoid(gates[:, 3 * H:4 * H])
        c = f * c + i * g
        h = o * jnp.tanh(c)
        return (h, c), h

    (h, c), hs = jax.lax.scan(step, (h, c), x)
    s = hs @ params["W_out"] + params["b_out"][0]
    return s, (h[None], c[None])


def init_params(key, vocab_size, embed_size, hidden_size, pad_idx):
    """Deterministic synthetic parameters matching CharDecoder.__init__ shapes."""
    k1, k2, k3, k4, k5, k6 = jax.random.split(key, 6)
    H = hidden_size
    # nn.Embedding(vocab, embed, padding_idx=pad) -> zero the pad row
    emb = 0.1 * jax.random.normal(k1, (vocab_size, embed_size), jnp.float32)
    emb = emb.at[pad_idx].set(0.0)
    # nn.LSTM weights, stored transposed: (E, 4H), (H, 4H); U(-1/sqrt(H), 1/sqrt(H))
    s = 1.0 / jnp.sqrt(jnp.float32(H))
    W_ih = jax.random.uniform(k2, (embed_size, 4 * H), jnp.float32, -s, s)
    W_hh = jax.random.uniform(k3, (H, 4 * H), jnp.float32, -s, s)
    b_ih = jax.random.uniform(k4, (4 * H,), jnp.float32, -s, s)
    b_hh = jax.random.uniform(k5, (4 * H,), jnp.float32, -s, s)
    # char_output_projection: xavier_normal_ on the (V, H) weight; stored as (H, V)
    std = jnp.sqrt(2.0 / jnp.float32(H + vocab_size))
    W_out = std * jax.random.normal(k6, (H, vocab_size), jnp.float32)
    b_out = jnp.zeros((1, vocab_size), jnp.float32)
    return {
        "embedding": emb,
        "W_ih": W_ih,
        "W_hh": W_hh,
        "b": (b_ih + b_hh)[None, :],
        "W_out": W_out,
        "b_out": b_out,
    }


if __name__ == "__main__":
    # Small shapes consistent with the module: seq length 8, batch 4,
    # char_embedding_size 50 (module default), hidden 32, char vocab 30.
    L, B, E, H, V = 8, 4, 50, 32, 30
    pad_idx = 0

    key = jax.random.PRNGKey(0)
    pkey, ikey, hkey, ckey = jax.random.split(key, 4)

    params = init_params(pkey, V, E, H, pad_idx)
    input_ids = jax.random.randint(ikey, (L, B), 0, V, dtype=jnp.int32)
    h0 = jax.random.normal(hkey, (1, B, H), jnp.float32)
    c0 = jax.random.normal(ckey, (1, B, H), jnp.float32)

    # Pure-JAX reference for correctness checking.
    s_ref, (h_ref, c_ref) = reference_forward(input_ids, params, (h0, c0))

    # ---- f32 MXU operands: exact parity with the f32 reference ----
    prep_f32 = prepare_params(params, matmul_dtype=jnp.float32)   # one-time
    scores, (h_n, c_n) = char_decoder_forward(input_ids, prep_f32, (h0, c0))
    jax.block_until_ready(scores)

    assert scores.shape == (L, B, V)
    assert h_n.shape == (1, B, H) and c_n.shape == (1, B, H)
    assert jnp.allclose(scores, s_ref, atol=1e-4, rtol=1e-4)
    assert jnp.allclose(h_n, h_ref, atol=1e-4, rtol=1e-4)
    assert jnp.allclose(c_n, c_ref, atol=1e-4, rtol=1e-4)

    # ---- bf16 MXU operands (recommended on v6e/v7x), f32 accumulation ----
    prep_bf16 = prepare_params(params, matmul_dtype=jnp.bfloat16)
    s16, (h16, c16) = char_decoder_forward(input_ids, prep_bf16, (h0, c0))
    jax.block_until_ready(s16)
    assert jnp.allclose(s16, s_ref, atol=5e-2, rtol=5e-2)
    assert jnp.allclose(h16, h_ref, atol=5e-2, rtol=5e-2)
    assert jnp.allclose(c16, c_ref, atol=5e-2, rtol=5e-2)

    # TODO(synk): decode_greedy's Python string assembly / vocab lookup and the
    # train_forward CrossEntropyLoss path are host-side / not part of forward();
    # not implemented as kernels.
    print("KERNEL_OK")
</pallas_src>

<mosaic_0001>
module attributes {stable_mosaic.version = 11 : i64} {
  func.func @_char_decoder_kernel(%arg0: i32, %arg1: memref<8x8x512xf32, #tpu.memory_space<vmem>>, %arg2: memref<128x512xf32, #tpu.memory_space<vmem>>, %arg3: memref<128x128xf32, #tpu.memory_space<vmem>>, %arg4: memref<1x128xf32, #tpu.memory_space<vmem>>, %arg5: memref<8x128xf32, #tpu.memory_space<vmem>>, %arg6: memref<8x128xf32, #tpu.memory_space<vmem>>, %arg7: memref<8x8x128xf32, #tpu.memory_space<vmem>>, %arg8: memref<8x128xf32, #tpu.memory_space<vmem>>, %arg9: memref<8x128xf32, #tpu.memory_space<vmem>>, %arg10: memref<8x8x128xf32, #tpu.memory_space<vmem>>) attributes {dimension_semantics = [#tpu.dimension_semantics<arbitrary>], iteration_bounds = array<i64: 1>, scalar_prefetch = 0 : i64, scratch_operands = 1 : i64, tpu.core_type = #tpu.core_type<tc>, window_params = [{pipeline_mode = #tpu.pipeline_mode<synchronous>, transform_indices = @transform_0, window_bounds = array<i64: 8, 8, 512>}, {pipeline_mode = #tpu.pipeline_mode<synchronous>, transform_indices = @transform_1, window_bounds = array<i64: 128, 512>}, {pipeline_mode = #tpu.pipeline_mode<synchronous>, transform_indices = @transform_2, window_bounds = array<i64: 128, 128>}, {pipeline_mode = #tpu.pipeline_mode<synchronous>, transform_indices = @transform_3, window_bounds = array<i64: 1, 128>}, {pipeline_mode = #tpu.pipeline_mode<synchronous>, transform_indices = @transform_4, window_bounds = array<i64: 8, 128>}, {pipeline_mode = #tpu.pipeline_mode<synchronous>, transform_indices = @transform_5, window_bounds = array<i64: 8, 128>}, {pipeline_mode = #tpu.pipeline_mode<synchronous>, transform_indices = @transform_6, window_bounds = array<i64: 8, 8, 128>}, {pipeline_mode = #tpu.pipeline_mode<synchronous>, transform_indices = @transform_7, window_bounds = array<i64: 8, 128>}, {pipeline_mode = #tpu.pipeline_mode<synchronous>, transform_indices = @transform_8, window_bounds = array<i64: 8, 128>}]} {
    %c0 = arith.constant 0 : index
    %c0_0 = arith.constant 0 : index
    %0 = vector.load %arg5[%c0, %c0_0] : memref<8x128xf32, #tpu.memory_space<vmem>>, vector<8x128xf32>
    %c0_1 = arith.constant 0 : index
    %c0_2 = arith.constant 0 : index
    %1 = vector.load %arg6[%c0_1, %c0_2] : memref<8x128xf32, #tpu.memory_space<vmem>>, vector<8x128xf32>
    %c0_i32 = arith.constant 0 : i32
    %2 = arith.index_cast %c0_i32 : i32 to index
    %c0_3 = arith.constant 0 : index
    %c0_4 = arith.constant 0 : index
    %3 = vector.load %arg1[%2, %c0_3, %c0_4] : memref<8x8x512xf32, #tpu.memory_space<vmem>>, vector<1x8x512xf32>
    %4 = vector.shape_cast %3 : vector<1x8x512xf32> to vector<8x512xf32>
    %c0_5 = arith.constant 0 : index
    %c0_6 = arith.constant 0 : index
    %5 = vector.load %arg2[%c0_5, %c0_6] : memref<128x512xf32, #tpu.memory_space<vmem>>, vector<128x512xf32>
    %cst = arith.constant dense<0.000000e+00> : vector<8x512xf32>
    %6 = tpu.matmul %0, %5, %cst {dimension_numbers = #tpu.dot_dimension_numbers<[1], [0], [0], [1], [0, 0, 1, 1], [], []>} : vector<8x128xf32>, vector<128x512xf32>, vector<8x512xf32> -> vector<8x512xf32>
    %7 = arith.addf %4, %6 : vector<8x512xf32>
    %8 = math.tanh %7 : vector<8x512xf32>
    %9 = vector.extract_strided_slice %8 {offsets = [0, 0], sizes = [8, 128], strides = [1, 1]} : vector<8x512xf32> to vector<8x128xf32>
    %cst_7 = arith.constant 5.000000e-01 : f32
    %10 = vector.broadcast %cst_7 : f32 to vector<8x128xf32>
    %11 = arith.mulf %10, %9 : vector<8x128xf32>
    %cst_8 = arith.constant 5.000000e-01 : f32
    %12 = vector.broadcast %cst_8 : f32 to vector<8x128xf32>
    %13 = arith.addf %11, %12 : vector<8x128xf32>
    %14 = vector.extract_strided_slice %8 {offsets = [0, 128], sizes = [8, 128], strides = [1, 1]} : vector<8x512xf32> to vector<8x128xf32>
    %cst_9 = arith.constant 5.000000e-01 : f32
    %15 = vector.broadcast %cst_9 : f32 to vector<8x128xf32>
    %16 = arith.mulf %15, %14 : vector<8x128xf32>
    %cst_10 = arith.constant 5.000000e-01 : f32
    %17 = vector.broadcast %cst_10 : f32 to vector<8x128xf32>
    %18 = arith.addf %16, %17 : vector<8x128xf32>
    %19 = vector.extract_strided_slice %8 {offsets = [0, 256], sizes = [8, 128], strides = [1, 1]} : vector<8x512xf32> to vector<8x128xf32>
    %20 = vector.extract_strided_slice %8 {offsets = [0, 384], sizes = [8, 128], strides = [1, 1]} : vector<8x512xf32> to vector<8x128xf32>
    %cst_11 = arith.constant 5.000000e-01 : f32
    %21 = vector.broadcast %cst_11 : f32 to vector<8x128xf32>
    %22 = arith.mulf %21, %20 : vector<8x128xf32>
    %cst_12 = arith.constant 5.000000e-01 : f32
    %23 = vector.broadcast %cst_12 : f32 to vector<8x128xf32>
    %24 = arith.addf %22, %23 : vector<8x128xf32>
    %25 = arith.mulf %18, %1 : vector<8x128xf32>
    %26 = arith.mulf %13, %19 : vector<8x128xf32>
    %27 = arith.addf %25, %26 : vector<8x128xf32>
    %28 = math.tanh %27 : vector<8x128xf32>
    %29 = arith.mulf %24, %28 : vector<8x128xf32>
    %30 = arith.index_cast %c0_i32 : i32 to index
    %c0_13 = arith.constant 0 : index
    %c0_14 = arith.constant 0 : index
    %31 = vector.load %arg10[%30, %c0_13, %c0_14] : memref<8x8x128xf32, #tpu.memory_space<vmem>>, vector<1x8x128xf32>
    %32 = vector.shape_cast %31 : vector<1x8x128xf32> to vector<8x128xf32>
    %33 = vector.shape_cast %29 : vector<8x128xf32> to vector<1x8x128xf32>
    tpu.vector_store %arg10[%30, %c0_13, %c0_14], %33 {strides = array<i32>} : memref<8x8x128xf32, #tpu.memory_space<vmem>>, vector<1x8x128xf32>,
    %c1_i32 = arith.constant 1 : i32
    %34 = arith.index_cast %c1_i32 : i32 to index
    %c0_15 = arith.constant 0 : index
    %c0_16 = arith.constant 0 : index
    %35 = vector.load %arg1[%34, %c0_15, %c0_16] : memref<8x8x512xf32, #tpu.memory_space<vmem>>, vector<1x8x512xf32>
    %36 = vector.shape_cast %35 : vector<1x8x512xf32> to vector<8x512xf32>
    %c0_17 = arith.constant 0 : index
    %c0_18 = arith.constant 0 : index
    %37 = vector.load %arg2[%c0_17, %c0_18] : memref<128x512xf32, #tpu.memory_space<vmem>>, vector<128x512xf32>
    %cst_19 = arith.constant dense<0.000000e+00> : vector<8x512xf32>
    %38 = tpu.matmul %29, %37, %cst_19 {dimension_numbers = #tpu.dot_dimension_numbers<[1], [0], [0], [1], [0, 0, 1, 1], [], []>} : vector<8x128xf32>, vector<128x512xf32>, vector<8x512xf32> -> vector<8x512xf32>
    %39 = arith.addf %36, %38 : vector<8x512xf32>
    %40 = math.tanh %39 : vector<8x512xf32>
    %41 = vector.extract_strided_slice %40 {offsets = [0, 0], sizes = [8, 128], strides = [1, 1]} : vector<8x512xf32> to vector<8x128xf32>
    %cst_20 = arith.constant 5.000000e-01 : f32
    %42 = vector.broadcast %cst_20 : f32 to vector<8x128xf32>
    %43 = arith.mulf %42, %41 : vector<8x128xf32>
    %cst_21 = arith.constant 5.000000e-01 : f32
    %44 = vector.broadcast %cst_21 : f32 to vector<8x128xf32>
    %45 = arith.addf %43, %44 : vector<8x128xf32>
    %46 = vector.extract_strided_slice %40 {offsets = [0, 128], sizes = [8, 128], strides = [1, 1]} : vector<8x512xf32> to vector<8x128xf32>
    %cst_22 = arith.constant 5.000000e-01 : f32
    %47 = vector.broadcast %cst_22 : f32 to vector<8x128xf32>
    %48 = arith.mulf %47, %46 : vector<8x128xf32>
    %cst_23 = arith.constant 5.000000e-01 : f32
    %49 = vector.broadcast %cst_23 : f32 to vector<8x128xf32>
    %50 = arith.addf %48, %49 : vector<8x128xf32>
    %51 = vector.extract_strided_slice %40 {offsets = [0, 256], sizes = [8, 128], strides = [1, 1]} : vector<8x512xf32> to vector<8x128xf32>
    %52 = vector.extract_strided_slice %40 {offsets = [0, 384], sizes = [8, 128], strides = [1, 1]} : vector<8x512xf32> to vector<8x128xf32>
    %cst_24 = arith.constant 5.000000e-01 : f32
    %53 = vector.broadcast %cst_24 : f32 to vector<8x128xf32>
    %54 = arith.mulf %53, %52 : vector<8x128xf32>
    %cst_25 = arith.constant 5.000000e-01 : f32
    %55 = vector.broadcast %cst_25 : f32 to vector<8x128xf32>
    %56 = arith.addf %54, %55 : vector<8x128xf32>
    %57 = arith.mulf %50, %27 : vector<8x128xf32>
    %58 = arith.mulf %45, %51 : vector<8x128xf32>
    %59 = arith.addf %57, %58 : vector<8x128xf32>
    %60 = math.tanh %59 : vector<8x128xf32>
    %61 = arith.mulf %56, %60 : vector<8x128xf32>
    %62 = arith.index_cast %c1_i32 : i32 to index
    %c0_26 = arith.constant 0 : index
    %c0_27 = arith.constant 0 : index
    %63 = vector.load %arg10[%62, %c0_26, %c0_27] : memref<8x8x128xf32, #tpu.memory_space<vmem>>, vector<1x8x128xf32>
    %64 = vector.shape_cast %63 : vector<1x8x128xf32> to vector<8x128xf32>
    %65 = vector.shape_cast %61 : vector<8x128xf32> to vector<1x8x128xf32>
    tpu.vector_store %arg10[%62, %c0_26, %c0_27], %65 {strides = array<i32>} : memref<8x8x128xf32, #tpu.memory_space<vmem>>, vector<1x8x128xf32>,
    %c2_i32 = arith.constant 2 : i32
    %66 = arith.index_cast %c2_i32 : i32 to index
    %c0_28 = arith.constant 0 : index
    %c0_29 = arith.constant 0 : index
    %67 = vector.load %arg1[%66, %c0_28, %c0_29] : memref<8x8x512xf32, #tpu.memory_space<vmem>>, vector<1x8x512xf32>
    %68 = vector.shape_cast %67 : vector<1x8x512xf32> to vector<8x512xf32>
    %c0_30 = arith.constant 0 : index
    %c0_31 = arith.constant 0 : index
    %69 = vector.load %arg2[%c0_30, %c0_31] : memref<128x512xf32, #tpu.memory_space<vmem>>, vector<128x512xf32>
    %cst_32 = arith.constant dense<0.000000e+00> : vector<8x512xf32>
    %70 = tpu.matmul %61, %69, %cst_32 {dimension_numbers = #tpu.dot_dimension_numbers<[1], [0], [0], [1], [0, 0, 1, 1], [], []>} : vector<8x128xf32>, vector<128x512xf32>, vector<8x512xf32> -> vector<8x512xf32>
    %71 = arith.addf %68, %70 : vector<8x512xf32>
    %72 = math.tanh %71 : vector<8x512xf32>
    %73 = vector.extract_strided_slice %72 {offsets = [0, 0], sizes = [8, 128], strides = [1, 1]} : vector<8x512xf32> to vector<8x128xf32>
    %cst_33 = arith.constant 5.000000e-01 : f32
    %74 = vector.broadcast %cst_33 : f32 to vector<8x128xf32>
    %75 = arith.mulf %74, %73 : vector<8x128xf32>
    %cst_34 = arith.constant 5.000000e-01 : f32
    %76 = vector.broadcast %cst_34 : f32 to vector<8x128xf32>
    %77 = arith.addf %75, %76 : vector<8x128xf32>
    %78 = vector.extract_strided_slice %72 {offsets = [0, 128], sizes = [8, 128], strides = [1, 1]} : vector<8x512xf32> to vector<8x128xf32>
    %cst_35 = arith.constant 5.000000e-01 : f32
    %79 = vector.broadcast %cst_35 : f32 to vector<8x128xf32>
    %80 = arith.mulf %79, %78 : vector<8x128xf32>
    %cst_36 = arith.constant 5.000000e-01 : f32
    %81 = vector.broadcast %cst_36 : f32 to vector<8x128xf32>
    %82 = arith.addf %80, %81 : vector<8x128xf32>
    %83 = vector.extract_strided_slice %72 {offsets = [0, 256], sizes = [8, 128], strides = [1, 1]} : vector<8x512xf32> to vector<8x128xf32>
    %84 = vector.extract_strided_slice %72 {offsets = [0, 384], sizes = [8, 128], strides = [1, 1]} : vector<8x512xf32> to vector<8x128xf32>
    %cst_37 = arith.constant 5.000000e-01 : f32
    %85 = vector.broadcast %cst_37 : f32 to vector<8x128xf32>
    %86 = arith.mulf %85, %84 : vector<8x128xf32>
    %cst_38 = arith.constant 5.000000e-01 : f32
    %87 = vector.broadcast %cst_38 : f32 to vector<8x128xf32>
    %88 = arith.addf %86, %87 : vector<8x128xf32>
    %89 = arith.mulf %82, %59 : vector<8x128xf32>
    %90 = arith.mulf %77, %83 : vector<8x128xf32>
    %91 = arith.addf %89, %90 : vector<8x128xf32>
    %92 = math.tanh %91 : vector<8x128xf32>
    %93 = arith.mulf %88, %92 : vector<8x128xf32>
    %94 = arith.index_cast %c2_i32 : i32 to index
    %c0_39 = arith.constant 0 : index
    %c0_40 = arith.constant 0 : index
    %95 = vector.load %arg10[%94, %c0_39, %c0_40] : memref<8x8x128xf32, #tpu.memory_space<vmem>>, vector<1x8x128xf32>
    %96 = vector.shape_cast %95 : vector<1x8x128xf32> to vector<8x128xf32>
    %97 = vector.shape_cast %93 : vector<8x128xf32> to vector<1x8x128xf32>
    tpu.vector_store %arg10[%94, %c0_39, %c0_40], %97 {strides = array<i32>} : memref<8x8x128xf32, #tpu.memory_space<vmem>>, vector<1x8x128xf32>,
    %c3_i32 = arith.constant 3 : i32
    %98 = arith.index_cast %c3_i32 : i32 to index
    %c0_41 = arith.constant 0 : index
    %c0_42 = arith.constant 0 : index
    %99 = vector.load %arg1[%98, %c0_41, %c0_42] : memref<8x8x512xf32, #tpu.memory_space<vmem>>, vector<1x8x512xf32>
    %100 = vector.shape_cast %99 : vector<1x8x512xf32> to vector<8x512xf32>
    %c0_43 = arith.constant 0 : index
    %c0_44 = arith.constant 0 : index
    %101 = vector.load %arg2[%c0_43, %c0_44] : memref<128x512xf32, #tpu.memory_space<vmem>>, vector<128x512xf32>
    %cst_45 = arith.constant dense<0.000000e+00> : vector<8x512xf32>
    %102 = tpu.matmul %93, %101, %cst_45 {dimension_numbers = #tpu.dot_dimension_numbers<[1], [0], [0], [1], [0, 0, 1, 1], [], []>} : vector<8x128xf32>, vector<128x512xf32>, vector<8x512xf32> -> vector<8x512xf32>
    %103 = arith.addf %100, %102 : vector<8x512xf32>
    %104 = math.tanh %103 : vector<8x512xf32>
    %105 = vector.extract_strided_slice %104 {offsets = [0, 0], sizes = [8, 128], strides = [1, 1]} : vector<8x512xf32> to vector<8x128xf32>
    %cst_46 = arith.constant 5.000000e-01 : f32
    %106 = vector.broadcast %cst_46 : f32 to vector<8x128xf32>
    %107 = arith.mulf %106, %105 : vector<8x128xf32>
    %cst_47 = arith.constant 5.000000e-01 : f32
    %108 = vector.broadcast %cst_47 : f32 to vector<8x128xf32>
    %109 = arith.addf %107, %108 : vector<8x128xf32>
    %110 = vector.extract_strided_slice %104 {offsets = [0, 128], sizes = [8, 128], strides = [1, 1]} : vector<8x512xf32> to vector<8x128xf32>
    %cst_48 = arith.constant 5.000000e-01 : f32
    %111 = vector.broadcast %cst_48 : f32 to vector<8x128xf32>
    %112 = arith.mulf %111, %110 : vector<8x128xf32>
    %cst_49 = arith.constant 5.000000e-01 : f32
    %113 = vector.broadcast %cst_49 : f32 to vector<8x128xf32>
    %114 = arith.addf %112, %113 : vector<8x128xf32>
    %115 = vector.extract_strided_slice %104 {offsets = [0, 256], sizes = [8, 128], strides = [1, 1]} : vector<8x512xf32> to vector<8x128xf32>
    %116 = vector.extract_strided_slice %104 {offsets = [0, 384], sizes = [8, 128], strides = [1, 1]} : vector<8x512xf32> to vector<8x128xf32>
    %cst_50 = arith.constant 5.000000e-01 : f32
    %117 = vector.broadcast %cst_50 : f32 to vector<8x128xf32>
    %118 = arith.mulf %117, %116 : vector<8x128xf32>
    %cst_51 = arith.constant 5.000000e-01 : f32
    %119 = vector.broadcast %cst_51 : f32 to vector<8x128xf32>
    %120 = arith.addf %118, %119 : vector<8x128xf32>
    %121 = arith.mulf %114, %91 : vector<8x128xf32>
    %122 = arith.mulf %109, %115 : vector<8x128xf32>
    %123 = arith.addf %121, %122 : vector<8x128xf32>
    %124 = math.tanh %123 : vector<8x128xf32>
    %125 = arith.mulf %120, %124 : vector<8x128xf32>
    %126 = arith.index_cast %c3_i32 : i32 to index
    %c0_52 = arith.constant 0 : index
    %c0_53 = arith.constant 0 : index
    %127 = vector.load %arg10[%126, %c0_52, %c0_53] : memref<8x8x128xf32, #tpu.memory_space<vmem>>, vector<1x8x128xf32>
    %128 = vector.shape_cast %127 : vector<1x8x128xf32> to vector<8x128xf32>
    %129 = vector.shape_cast %125 : vector<8x128xf32> to vector<1x8x128xf32>
    tpu.vector_store %arg10[%126, %c0_52, %c0_53], %129 {strides = array<i32>} : memref<8x8x128xf32, #tpu.memory_space<vmem>>, vector<1x8x128xf32>,
    %c4_i32 = arith.constant 4 : i32
    %130 = arith.index_cast %c4_i32 : i32 to index
    %c0_54 = arith.constant 0 : index
    %c0_55 = arith.constant 0 : index
    %131 = vector.load %arg1[%130, %c0_54, %c0_55] : memref<8x8x512xf32, #tpu.memory_space<vmem>>, vector<1x8x512xf32>
    %132 = vector.shape_cast %131 : vector<1x8x512xf32> to vector<8x512xf32>
    %c0_56 = arith.constant 0 : index
    %c0_57 = arith.constant 0 : index
    %133 = vector.load %arg2[%c0_56, %c0_57] : memref<128x512xf32, #tpu.memory_space<vmem>>, vector<128x512xf32>
    %cst_58 = arith.constant dense<0.000000e+00> : vector<8x512xf32>
    %134 = tpu.matmul %125, %133, %cst_58 {dimension_numbers = #tpu.dot_dimension_numbers<[1], [0], [0], [1], [0, 0, 1, 1], [], []>} : vector<8x128xf32>, vector<128x512xf32>, vector<8x512xf32> -> vector<8x512xf32>
    %135 = arith.addf %132, %134 : vector<8x512xf32>
    %136 = math.tanh %135 : vector<8x512xf32>
    %137 = vector.extract_strided_slice %136 {offsets = [0, 0], sizes = [8, 128], strides = [1, 1]} : vector<8x512xf32> to vector<8x128xf32>
    %cst_59 = arith.constant 5.000000e-01 : f32
    %138 = vector.broadcast %cst_59 : f32 to vector<8x128xf32>
    %139 = arith.mulf %138, %137 : vector<8x128xf32>
    %cst_60 = arith.constant 5.000000e-01 : f32
    %140 = vector.broadcast %cst_60 : f32 to vector<8x128xf32>
    %141 = arith.addf %139, %140 : vector<8x128xf32>
    %142 = vector.extract_strided_slice %136 {offsets = [0, 128], sizes = [8, 128], strides = [1, 1]} : vector<8x512xf32> to vector<8x128xf32>
    %cst_61 = arith.constant 5.000000e-01 : f32
    %143 = vector.broadcast %cst_61 : f32 to vector<8x128xf32>
    %144 = arith.mulf %143, %142 : vector<8x128xf32>
    %cst_62 = arith.constant 5.000000e-01 : f32
    %145 = vector.broadcast %cst_62 : f32 to vector<8x128xf32>
    %146 = arith.addf %144, %145 : vector<8x128xf32>
    %147 = vector.extract_strided_slice %136 {offsets = [0, 256], sizes = [8, 128], strides = [1, 1]} : vector<8x512xf32> to vector<8x128xf32>
    %148 = vector.extract_strided_slice %136 {offsets = [0, 384], sizes = [8, 128], strides = [1, 1]} : vector<8x512xf32> to vector<8x128xf32>
    %cst_63 = arith.constant 5.000000e-01 : f32
    %149 = vector.broadcast %cst_63 : f32 to vector<8x128xf32>
    %150 = arith.mulf %149, %148 : vector<8x128xf32>
    %cst_64 = arith.constant 5.000000e-01 : f32
    %151 = vector.broadcast %cst_64 : f32 to vector<8x128xf32>
    %152 = arith.addf %150, %151 : vector<8x128xf32>
    %153 = arith.mulf %146, %123 : vector<8x128xf32>
    %154 = arith.mulf %141, %147 : vector<8x128xf32>
    %155 = arith.addf %153, %154 : vector<8x128xf32>
    %156 = math.tanh %155 : vector<8x128xf32>
    %157 = arith.mulf %152, %156 : vector<8x128xf32>
    %158 = arith.index_cast %c4_i32 : i32 to index
    %c0_65 = arith.constant 0 : index
    %c0_66 = arith.constant 0 : index
    %159 = vector.load %arg10[%158, %c0_65, %c0_66] : memref<8x8x128xf32, #tpu.memory_space<vmem>>, vector<1x8x128xf32>
    %160 = vector.shape_cast %159 : vector<1x8x128xf32> to vector<8x128xf32>
    %161 = vector.shape_cast %157 : vector<8x128xf32> to vector<1x8x128xf32>
    tpu.vector_store %arg10[%158, %c0_65, %c0_66], %161 {strides = array<i32>} : memref<8x8x128xf32, #tpu.memory_space<vmem>>, vector<1x8x128xf32>,
    %c5_i32 = arith.constant 5 : i32
    %162 = arith.index_cast %c5_i32 : i32 to index
    %c0_67 = arith.constant 0 : index
    %c0_68 = arith.constant 0 : index
    %163 = vector.load %arg1[%162, %c0_67, %c0_68] : memref<8x8x512xf32, #tpu.memory_space<vmem>>, vector<1x8x512xf32>
    %164 = vector.shape_cast %163 : vector<1x8x512xf32> to vector<8x512xf32>
    %c0_69 = arith.constant 0 : index
    %c0_70 = arith.constant 0 : index
    %165 = vector.load %arg2[%c0_69, %c0_70] : memref<128x512xf32, #tpu.memory_space<vmem>>, vector<128x512xf32>
    %cst_71 = arith.constant dense<0.000000e+00> : vector<8x512xf32>
    %166 = tpu.matmul %157, %165, %cst_71 {dimension_numbers = #tpu.dot_dimension_numbers<[1], [0], [0], [1], [0, 0, 1, 1], [], []>} : vector<8x128xf32>, vector<128x512xf32>, vector<8x512xf32> -> vector<8x512xf32>
    %167 = arith.addf %164, %166 : vector<8x512xf32>
    %168 = math.tanh %167 : vector<8x512xf32>
    %169 = vector.extract_strided_slice %168 {offsets = [0, 0], sizes = [8, 128], strides = [1, 1]} : vector<8x512xf32> to vector<8x128xf32>
    %cst_72 = arith.constant 5.000000e-01 : f32
    %170 = vector.broadcast %cst_72 : f32 to vector<8x128xf32>
    %171 = arith.mulf %170, %169 : vector<8x128xf32>
    %cst_73 = arith.constant 5.000000e-01 : f32
    %172 = vector.broadcast %cst_73 : f32 to vector<8x128xf32>
    %173 = arith.addf %171, %172 : vector<8x128xf32>
    %174 = vector.extract_strided_slice %168 {offsets = [0, 128], sizes = [8, 128], strides = [1, 1]} : vector<8x512xf32> to vector<8x128xf32>
    %cst_74 = arith.constant 5.000000e-01 : f32
    %175 = vector.broadcast %cst_74 : f32 to vector<8x128xf32>
    %176 = arith.mulf %175, %174 : vector<8x128xf32>
    %cst_75 = arith.constant 5.000000e-01 : f32
    %177 = vector.broadcast %cst_75 : f32 to vector<8x128xf32>
    %178 = arith.addf %176, %177 : vector<8x128xf32>
    %179 = vector.extract_strided_slice %168 {offsets = [0, 256], sizes = [8, 128], strides = [1, 1]} : vector<8x512xf32> to vector<8x128xf32>
    %180 = vector.extract_strided_slice %168 {offsets = [0, 384], sizes = [8, 128], strides = [1, 1]} : vector<8x512xf32> to vector<8x128xf32>
    %cst_76 = arith.constant 5.000000e-01 : f32
    %181 = vector.broadcast %cst_76 : f32 to vector<8x128xf32>
    %182 = arith.mulf %181, %180 : vector<8x128xf32>
    %cst_77 = arith.constant 5.000000e-01 : f32
    %183 = vector.broadcast %cst_77 : f32 to vector<8x128xf32>
    %184 = arith.addf %182, %183 : vector<8x128xf32>
    %185 = arith.mulf %178, %155 : vector<8x128xf32>
    %186 = arith.mulf %173, %179 : vector<8x128xf32>
    %187 = arith.addf %185, %186 : vector<8x128xf32>
    %188 = math.tanh %187 : vector<8x128xf32>
    %189 = arith.mulf %184, %188 : vector<8x128xf32>
    %190 = arith.index_cast %c5_i32 : i32 to index
    %c0_78 = arith.constant 0 : index
    %c0_79 = arith.constant 0 : index
    %191 = vector.load %arg10[%190, %c0_78, %c0_79] : memref<8x8x128xf32, #tpu.memory_space<vmem>>, vector<1x8x128xf32>
    %192 = vector.shape_cast %191 : vector<1x8x128xf32> to vector<8x128xf32>
    %193 = vector.shape_cast %189 : vector<8x128xf32> to vector<1x8x128xf32>
    tpu.vector_store %arg10[%190, %c0_78, %c0_79], %193 {strides = array<i32>} : memref<8x8x128xf32, #tpu.memory_space<vmem>>, vector<1x8x128xf32>,
    %c6_i32 = arith.constant 6 : i32
    %194 = arith.index_cast %c6_i32 : i32 to index
    %c0_80 = arith.constant 0 : index
    %c0_81 = arith.constant 0 : index
    %195 = vector.load %arg1[%194, %c0_80, %c0_81] : memref<8x8x512xf32, #tpu.memory_space<vmem>>, vector<1x8x512xf32>
    %196 = vector.shape_cast %195 : vector<1x8x512xf32> to vector<8x512xf32>
    %c0_82 = arith.constant 0 : index
    %c0_83 = arith.constant 0 : index
    %197 = vector.load %arg2[%c0_82, %c0_83] : memref<128x512xf32, #tpu.memory_space<vmem>>, vector<128x512xf32>
    %cst_84 = arith.constant dense<0.000000e+00> : vector<8x512xf32>
    %198 = tpu.matmul %189, %197, %cst_84 {dimension_numbers = #tpu.dot_dimension_numbers<[1], [0], [0], [1], [0, 0, 1, 1], [], []>} : vector<8x128xf32>, vector<128x512xf32>, vector<8x512xf32> -> vector<8x512xf32>
    %199 = arith.addf %196, %198 : vector<8x512xf32>
    %200 = math.tanh %199 : vector<8x512xf32>
    %201 = vector.extract_strided_slice %200 {offsets = [0, 0], sizes = [8, 128], strides = [1, 1]} : vector<8x512xf32> to vector<8x128xf32>
    %cst_85 = arith.constant 5.000000e-01 : f32
    %202 = vector.broadcast %cst_85 : f32 to vector<8x128xf32>
    %203 = arith.mulf %202, %201 : vector<8x128xf32>
    %cst_86 = arith.constant 5.000000e-01 : f32
    %204 = vector.broadcast %cst_86 : f32 to vector<8x128xf32>
    %205 = arith.addf %203, %204 : vector<8x128xf32>
    %206 = vector.extract_strided_slice %200 {offsets = [0, 128], sizes = [8, 128], strides = [1, 1]} : vector<8x512xf32> to vector<8x128xf32>
    %cst_87 = arith.constant 5.000000e-01 : f32
    %207 = vector.broadcast %cst_87 : f32 to vector<8x128xf32>
    %208 = arith.mulf %207, %206 : vector<8x128xf32>
    %cst_88 = arith.constant 5.000000e-01 : f32
    %209 = vector.broadcast %cst_88 : f32 to vector<8x128xf32>
    %210 = arith.addf %208, %209 : vector<8x128xf32>
    %211 = vector.extract_strided_slice %200 {offsets = [0, 256], sizes = [8, 128], strides = [1, 1]} : vector<8x512xf32> to vector<8x128xf32>
    %212 = vector.extract_strided_slice %200 {offsets = [0, 384], sizes = [8, 128], strides = [1, 1]} : vector<8x512xf32> to vector<8x128xf32>
    %cst_89 = arith.constant 5.000000e-01 : f32
    %213 = vector.broadcast %cst_89 : f32 to vector<8x128xf32>
    %214 = arith.mulf %213, %212 : vector<8x128xf32>
    %cst_90 = arith.constant 5.000000e-01 : f32
    %215 = vector.broadcast %cst_90 : f32 to vector<8x128xf32>
    %216 = arith.addf %214, %215 : vector<8x128xf32>
    %217 = arith.mulf %210, %187 : vector<8x128xf32>
    %218 = arith.mulf %205, %211 : vector<8x128xf32>
    %219 = arith.addf %217, %218 : vector<8x128xf32>
    %220 = math.tanh %219 : vector<8x128xf32>
    %221 = arith.mulf %216, %220 : vector<8x128xf32>
    %222 = arith.index_cast %c6_i32 : i32 to index
    %c0_91 = arith.constant 0 : index
    %c0_92 = arith.constant 0 : index
    %223 = vector.load %arg10[%222, %c0_91, %c0_92] : memref<8x8x128xf32, #tpu.memory_space<vmem>>, vector<1x8x128xf32>
    %224 = vector.shape_cast %223 : vector<1x8x128xf32> to vector<8x128xf32>
    %225 = vector.shape_cast %221 : vector<8x128xf32> to vector<1x8x128xf32>
    tpu.vector_store %arg10[%222, %c0_91, %c0_92], %225 {strides = array<i32>} : memref<8x8x128xf32, #tpu.memory_space<vmem>>, vector<1x8x128xf32>,
    %c7_i32 = arith.constant 7 : i32
    %226 = arith.index_cast %c7_i32 : i32 to index
    %c0_93 = arith.constant 0 : index
    %c0_94 = arith.constant 0 : index
    %227 = vector.load %arg1[%226, %c0_93, %c0_94] : memref<8x8x512xf32, #tpu.memory_space<vmem>>, vector<1x8x512xf32>
    %228 = vector.shape_cast %227 : vector<1x8x512xf32> to vector<8x512xf32>
    %c0_95 = arith.constant 0 : index
    %c0_96 = arith.constant 0 : index
    %229 = vector.load %arg2[%c0_95, %c0_96] : memref<128x512xf32, #tpu.memory_space<vmem>>, vector<128x512xf32>
    %cst_97 = arith.constant dense<0.000000e+00> : vector<8x512xf32>
    %230 = tpu.matmul %221, %229, %cst_97 {dimension_numbers = #tpu.dot_dimension_numbers<[1], [0], [0], [1], [0, 0, 1, 1], [], []>} : vector<8x128xf32>, vector<128x512xf32>, vector<8x512xf32> -> vector<8x512xf32>
    %231 = arith.addf %228, %230 : vector<8x512xf32>
    %232 = math.tanh %231 : vector<8x512xf32>
    %233 = vector.extract_strided_slice %232 {offsets = [0, 0], sizes = [8, 128], strides = [1, 1]} : vector<8x512xf32> to vector<8x128xf32>
    %cst_98 = arith.constant 5.000000e-01 : f32
    %234 = vector.broadcast %cst_98 : f32 to vector<8x128xf32>
    %235 = arith.mulf %234, %233 : vector<8x128xf32>
    %cst_99 = arith.constant 5.000000e-01 : f32
    %236 = vector.broadcast %cst_99 : f32 to vector<8x128xf32>
    %237 = arith.addf %235, %236 : vector<8x128xf32>
    %238 = vector.extract_strided_slice %232 {offsets = [0, 128], sizes = [8, 128], strides = [1, 1]} : vector<8x512xf32> to vector<8x128xf32>
    %cst_100 = arith.constant 5.000000e-01 : f32
    %239 = vector.broadcast %cst_100 : f32 to vector<8x128xf32>
    %240 = arith.mulf %239, %238 : vector<8x128xf32>
    %cst_101 = arith.constant 5.000000e-01 : f32
    %241 = vector.broadcast %cst_101 : f32 to vector<8x128xf32>
    %242 = arith.addf %240, %241 : vector<8x128xf32>
    %243 = vector.extract_strided_slice %232 {offsets = [0, 256], sizes = [8, 128], strides = [1, 1]} : vector<8x512xf32> to vector<8x128xf32>
    %244 = vector.extract_strided_slice %232 {offsets = [0, 384], sizes = [8, 128], strides = [1, 1]} : vector<8x512xf32> to vector<8x128xf32>
    %cst_102 = arith.constant 5.000000e-01 : f32
    %245 = vector.broadcast %cst_102 : f32 to vector<8x128xf32>
    %246 = arith.mulf %245, %244 : vector<8x128xf32>
    %cst_103 = arith.constant 5.000000e-01 : f32
    %247 = vector.broadcast %cst_103 : f32 to vector<8x128xf32>
    %248 = arith.addf %246, %247 : vector<8x128xf32>
    %249 = arith.mulf %242, %219 : vector<8x128xf32>
    %250 = arith.mulf %237, %243 : vector<8x128xf32>
    %251 = arith.addf %249, %250 : vector<8x128xf32>
    %252 = math.tanh %251 : vector<8x128xf32>
    %253 = arith.mulf %248, %252 : vector<8x128xf32>
    %254 = arith.index_cast %c7_i32 : i32 to index
    %c0_104 = arith.constant 0 : index
    %c0_105 = arith.constant 0 : index
    %255 = vector.load %arg10[%254, %c0_104, %c0_105] : memref<8x8x128xf32, #tpu.memory_space<vmem>>, vector<1x8x128xf32>
    %256 = vector.shape_cast %255 : vector<1x8x128xf32> to vector<8x128xf32>
    %257 = vector.shape_cast %253 : vector<8x128xf32> to vector<1x8x128xf32>
    tpu.vector_store %arg10[%254, %c0_104, %c0_105], %257 {strides = array<i32>} : memref<8x8x128xf32, #tpu.memory_space<vmem>>, vector<1x8x128xf32>,
    %c8_i32 = arith.constant 8 : i32
    %c0_106 = arith.constant 0 : index
    %c0_107 = arith.constant 0 : index
    %258 = vector.load %arg8[%c0_106, %c0_107] : memref<8x128xf32, #tpu.memory_space<vmem>>, vector<8x128xf32>
    tpu.vector_store %arg8[%c0_106, %c0_107], %253 {strides = array<i32>} : memref<8x128xf32, #tpu.memory_space<vmem>>, vector<8x128xf32>,
    %c0_108 = arith.constant 0 : index
    %c0_109 = arith.constant 0 : index
    %259 = vector.load %arg9[%c0_108, %c0_109] : memref<8x128xf32, #tpu.memory_space<vmem>>, vector<8x128xf32>
    tpu.vector_store %arg9[%c0_108, %c0_109], %251 {strides = array<i32>} : memref<8x128xf32, #tpu.memory_space<vmem>>, vector<8x128xf32>,
    %c0_110 = arith.constant 0 : index
    %c0_111 = arith.constant 0 : index
    %c0_112 = arith.constant 0 : index
    %260 = vector.load %arg10[%c0_110, %c0_111, %c0_112] : memref<8x8x128xf32, #tpu.memory_space<vmem>>, vector<8x8x128xf32>
    %261 = vector.shape_cast %260 : vector<8x8x128xf32> to vector<64x128xf32>
    %c0_113 = arith.constant 0 : index
    %c0_114 = arith.constant 0 : index
    %262 = vector.load %arg3[%c0_113, %c0_114] : memref<128x128xf32, #tpu.memory_space<vmem>>, vector<128x128xf32>
    %cst_115 = arith.constant dense<0.000000e+00> : vector<64x128xf32>
    %263 = tpu.matmul %261, %262, %cst_115 {dimension_numbers = #tpu.dot_dimension_numbers<[1], [0], [0], [1], [0, 0, 1, 1], [], []>} : vector<64x128xf32>, vector<128x128xf32>, vector<64x128xf32> -> vector<64x128xf32>
    %c0_116 = arith.constant 0 : index
    %c0_117 = arith.constant 0 : index
    %264 = vector.load %arg4[%c0_116, %c0_117] : memref<1x128xf32, #tpu.memory_space<vmem>>, vector<1x128xf32>
    %265 = vector.broadcast %264 : vector<1x128xf32> to vector<64x128xf32>
    %266 = arith.addf %263, %265 : vector<64x128xf32>
    %267 = vector.shape_cast %266 : vector<64x128xf32> to vector<8x8x128xf32>
    %c0_118 = arith.constant 0 : index
    %c0_119 = arith.constant 0 : index
    %c0_120 = arith.constant 0 : index
    %268 = vector.load %arg7[%c0_118, %c0_119, %c0_120] : memref<8x8x128xf32, #tpu.memory_space<vmem>>, vector<8x8x128xf32>
    tpu.vector_store %arg7[%c0_118, %c0_119, %c0_120], %267 {strides = array<i32>} : memref<8x8x128xf32, #tpu.memory_space<vmem>>, vector<8x8x128xf32>,
    return
  }
  func.func @transform_0(%arg0: i32) -> (i32, i32, i32) {
    %c0_i32 = arith.constant 0 : i32
    %c0_i32_0 = arith.constant 0 : i32
    %c0_i32_1 = arith.constant 0 : i32
    %c0_i32_2 = arith.constant 0 : i32
    return %c0_i32, %c0_i32_0, %c0_i32_1 : i32, i32, i32
  }
  func.func @transform_1(%arg0: i32) -> (i32, i32) {
    %c0_i32 = arith.constant 0 : i32
    %c0_i32_0 = arith.constant 0 : i32
    %c0_i32_1 = arith.constant 0 : i32
    return %c0_i32, %c0_i32_0 : i32, i32
  }
  func.func @transform_2(%arg0: i32) -> (i32, i32) {
    %c0_i32 = arith.constant 0 : i32
    %c0_i32_0 = arith.constant 0 : i32
    %c0_i32_1 = arith.constant 0 : i32
    return %c0_i32, %c0_i32_0 : i32, i32
  }
  func.func @transform_3(%arg0: i32) -> (i32, i32) {
    %c0_i32 = arith.constant 0 : i32
    %c0_i32_0 = arith.constant 0 : i32
    %c0_i32_1 = arith.constant 0 : i32
    return %c0_i32, %c0_i32_0 : i32, i32
  }
  func.func @transform_4(%arg0: i32) -> (i32, i32) {
    %c0_i32 = arith.constant 0 : i32
    %c0_i32_0 = arith.constant 0 : i32
    %c0_i32_1 = arith.constant 0 : i32
    return %c0_i32, %c0_i32_0 : i32, i32
  }
  func.func @transform_5(%arg0: i32) -> (i32, i32) {
    %c0_i32 = arith.constant 0 : i32
    %c0_i32_0 = arith.constant 0 : i32
    %c0_i32_1 = arith.constant 0 : i32
    return %c0_i32, %c0_i32_0 : i32, i32
  }
  func.func @transform_6(%arg0: i32) -> (i32, i32, i32) {
    %c0_i32 = arith.constant 0 : i32
    %c0_i32_0 = arith.constant 0 : i32
    %c0_i32_1 = arith.constant 0 : i32
    %c0_i32_2 = arith.constant 0 : i32
    return %c0_i32, %c0_i32_0, %c0_i32_1 : i32, i32, i32
  }
  func.func @transform_7(%arg0: i32) -> (i32, i32) {
    %c0_i32 = arith.constant 0 : i32
    %c0_i32_0 = arith.constant 0 : i32
    %c0_i32_1 = arith.constant 0 : i32
    return %c0_i32, %c0_i32_0 : i32, i32
  }
  func.func @transform_8(%arg0: i32) -> (i32, i32) {
    %c0_i32 = arith.constant 0 : i32
    %c0_i32_0 = arith.constant 0 : i32
    %c0_i32_1 = arith.constant 0 : i32
    return %c0_i32, %c0_i32_0 : i32, i32
  }
}

</mosaic_0001>

<bundles_post_ra>
// kernel: tpu_custom_call.1
= control target key start
LH: loop header
LB: loop body
LE: loop exit
PB: predicated region body
PF: predicated region fallthrough
CT: control target
= control target key end

     0   :  { %14 = vsyncpa [#allocation4], 0  ;;  %s3561_s0 = inlined_call_operand.hbm [shape: f32[8,8,512], index: 0, kind: input, shape index: {}]   ;;  %s3562_s1 = inlined_call_operand.hbm [shape: f32[128,512], index: 1, kind: input, shape index: {}]   ;;  %s3563_s2 = inlined_call_operand.hbm [shape: f32[128,128], index: 2, kind: input, shape index: {}]   ;;  %s3564_s3 = inlined_call_operand.vmem [shape: f32[1,128], index: 3, kind: input, shape index: {}]   ;;  %s3565_s4 = inlined_call_operand.vmem [shape: f32[8,128], index: 4, kind: input, shape index: {}]   ;;  %s3566_s5 = inlined_call_operand.vmem [shape: f32[8,128], index: 5, kind: input, shape index: {}]   ;;  %s3567_s6 = inlined_call_operand.hbm [shape: f32[8,8,128], index: 6, kind: output, shape index: {0}]   ;;  %s3568_s7 = inlined_call_operand.hbm [shape: f32[8,128], index: 7, kind: output, shape index: {1}]   ;;  %s3569_s8 = inlined_call_operand.hbm [shape: f32[8,128], index: 8, kind: output, shape index: {2}]  }
   0x1   :  { %15 = vsyncpa [#allocation7], 0 }
   0x2   :  { %16 = vsyncpa [#allocation5], 0 }
   0x3   :  { %17 = vsyncpa [#allocation11], 0  ;;  %s2960_s27 = smov [#allocation6]   ;;  %s2961_s29 = smov [#allocation3]  }
   0x4   :  { %s35_s28 = sshll.u32 %s2960_s27, 4  ;;  %s23_s30 = sshll.u32 %s2961_s29, 4  ;;  %s36_s28 = int_to_ptr.vmem [resolvable:$true] %s35_s28  ;;  %s3016_s30 = int_to_ptr.vmem [resolvable:$true] %s23_s30 }
   0x5   :  { %s2820_s11 = scalar_lea.hbm %s3562_s1, 8192 }
   0x6   :  { %p2821_p0 = scmp.ne.s32.totalorder %s3562_s1, %s2820_s11  ;;  %p2824_p1 = scmp.lt.u32.totalorder %s2820_s11, %s3562_s1 }
   0x8   :  { %p2826_p2 = pnand %p2824_p1, %p2821_p0 }
   0xa   :  { %2829 = shalt.err (!%p2826_p2)
}
   0xb   :  { %s2830_s16 = scalar_lea.vmem %s36_s28, 8192  ;;  %p2835_p4 = scmp.lt.s32.totalorder %s36_s28, %s36_s28 }
   0xc   :  { %p2831_p3 = scmp.ne.s32.totalorder %s36_s28, %s2830_s16  ;;  %p2836_p5 = scmp.lt.s32.totalorder %s2830_s16, %s2830_s16 }
   0xe   :  { %p2837_p6 = por %p2836_p5, %p2835_p4 }
  0x10   :  { %p2838_p7 = pnand %p2837_p6, %p2831_p3 }
  0x12   :  { %2841 = shalt.err (!%p2838_p7)
}
  0x13   :  { %s2962_s17 = smov 512   ;;  %s2963_s18 = smov 32  }
  0x14   :  { %41 = dma.hbm_to_vmem [thread:$0]  %s3562_s1, 8192, %s36_s28, [#allocation7], %s2962_s17, %s2962_s17, %s2963_s18  }
  0x15   :  { %s2842_s23 = scalar_lea.hbm %s3561_s0, 4096 }
  0x16   :  { %p2843_p8 = scmp.ne.s32.totalorder %s3561_s0, %s2842_s23  ;;  %p2846_p9 = scmp.lt.u32.totalorder %s2842_s23, %s3561_s0 }
  0x18   :  { %p2848_p10 = pnand %p2846_p9, %p2843_p8 }
  0x1a   :  { %2851 = shalt.err (!%p2848_p10)
}
  0x1b   :  { %s2852_s29 = scalar_lea.vmem %s3016_s30, 4096  ;;  %p2857_p12 = scmp.lt.s32.totalorder %s3016_s30, %s3016_s30 }
  0x1c   :  { %p2853_p11 = scmp.ne.s32.totalorder %s3016_s30, %s2852_s29  ;;  %p2858_p13 = scmp.lt.s32.totalorder %s2852_s29, %s2852_s29 }
  0x1e   :  { %p2859_p0 = por %p2858_p13, %p2857_p12 }
  0x20   :  { %p2860_p1 = pnand %p2859_p0, %p2853_p11 }
  0x22   :  { %2863 = shalt.err (!%p2860_p1)
}
  0x23   :  { %29 = dma.hbm_to_vmem [thread:$0]  %s3561_s0, 4096, %s3016_s30, [#allocation4], %s2962_s17, %s2962_s17, %s2963_s18  }
  0x24   :  { %s2964_s9 = smov [#allocation8]   ;;  %s2864_s13 = scalar_lea.hbm %s3563_s2, 2048 }
  0x25   :  { %s47_s10 = sshll.u32 %s2964_s9, 4  ;;  %p2865_p2 = scmp.ne.s32.totalorder %s3563_s2, %s2864_s13  ;;  %s48_s10 = int_to_ptr.vmem [resolvable:$true] %s47_s10 }
  0x26   :  { %p2868_p3 = scmp.lt.u32.totalorder %s2864_s13, %s3563_s2 }
  0x28   :  { %p2870_p4 = pnand %p2868_p3, %p2865_p2 }
  0x2a   :  { %2873 = shalt.err (!%p2870_p4)
}
  0x2b   :  { %s2874_s20 = scalar_lea.vmem %s48_s10, 2048  ;;  %p2879_p6 = scmp.lt.s32.totalorder %s48_s10, %s48_s10 }
  0x2c   :  { %p2875_p5 = scmp.ne.s32.totalorder %s48_s10, %s2874_s20  ;;  %p2880_p7 = scmp.lt.s32.totalorder %s2874_s20, %s2874_s20 }
  0x2e   :  { %p2881_p8 = por %p2880_p7, %p2879_p6 }
  0x30   :  { %p2882_p9 = pnand %p2881_p8, %p2875_p5 }
  0x32   :  { %2885 = shalt.err (!%p2882_p9)
}
  0x33   :  { %s2965_s0 = smov 128   ;;  %s2966_s30 = smov 8  }
  0x34   :  { %53 = dma.hbm_to_vmem [thread:$0]  %s3563_s2, 2048, %s48_s10, [#allocation7], %s2965_s0, %s2965_s0, %s2966_s30  }
  0x35   :  { %2952 = dma.done.wait [#allocation4], 4096  }
  0x36   :  { %2953 = vsyncadd [#allocation4], 4294963200 }
  0x37   :  { %2954 = dma.done.wait [#allocation7], 10240  }
  0x38   :  { %2955 = vsyncadd [#allocation7], 4294957056  ;;  %v2967_v0 = vmov 0.0   ;;  %v76_v1 = vld [vmem:[#allocation6 + $0x8] sm:$0xff]  ;;  %v75_v3 = vld [vmem:[#allocation6] sm:$0xff] }
  0x39   :  { %203 = vmatprep.mubr.f32.mxu1 %v2967_v0  ;;  %434 = vmatprep.mubr.f32.mxu0 %v2967_v0  ;;  %v80_v2 = vld [vmem:[#allocation6 + $0x28] sm:$0xff]  ;;  %v79_v5 = vld [vmem:[#allocation6 + $0x20] sm:$0xff]  ;;  %v78_v48 = vld [vmem:[#allocation6 + $0x18] sm:$0xff] }
  0x3a   :  { %v3064_v4 = vpack.c.bf16 %v80_v2, %v76_v1  ;;  %v84_v6 = vld [vmem:[#allocation6 + $0x48] sm:$0xff]  ;;  %v3066_v8 = vpack.c.bf16 %v79_v5, %v75_v3  ;;  %v83_v10 = vld [vmem:[#allocation6 + $0x40] sm:$0xff]  ;;  %v82_v49 = vld [vmem:[#allocation6 + $0x38] sm:$0xff] }
  0x3b   :  { %v88_v7 = vld [vmem:[#allocation6 + $0x68] sm:$0xff]  ;;  %v87_v11 = vld [vmem:[#allocation6 + $0x60] sm:$0xff]  ;;  %v3125_v51 = vpack.c.bf16 %v82_v49, %v78_v48  ;;  %v77_v52 = vld [vmem:[#allocation6 + $0x10] sm:$0xff] }
  0x3c   :  { %v3068_v9 = vpack.c.bf16 %v88_v7, %v84_v6  ;;  %v92_v12 = vld [vmem:[#allocation6 + $0x88] sm:$0xff]  ;;  %2186 = vmatprep.subr.bf16.mxu1 %v3064_v4  ;;  %2250 = vmatprep.subr.bf16.mxu0 %v3064_v4  ;;  %v3073_v14 = vpack.c.bf16 %v87_v11, %v83_v10  ;;  %v91_v16 = vld [vmem:[#allocation6 + $0x80] sm:$0xff]  ;;  %v81_v53 = vld [vmem:[#allocation6 + $0x30] sm:$0xff] }
  0x3d   :  { %v96_v13 = vld [vmem:[#allocation6 + $0xa8] sm:$0xff]  ;;  %2188 = vmatpush1.bf16.msra.mxu1 %v3066_v8  ;;  %2252 = vmatpush1.bf16.msra.mxu0 %v3066_v8  ;;  %v95_v17 = vld [vmem:[#allocation6 + $0xa0] sm:$0xff]  ;;  %v86_v54 = vld [vmem:[#allocation6 + $0x58] sm:$0xff]  ;;  %v3132_v57 = vpack.c.bf16 %v81_v53, %v77_v52 }
  0x3e   :  { %2190 = vmatprep.subr.bf16.mxu1 %v3068_v9  ;;  %v3077_v15 = vpack.c.bf16 %v96_v13, %v92_v12  ;;  %2254 = vmatprep.subr.bf16.mxu0 %v3068_v9  ;;  %v100_v18 = vld [vmem:[#allocation6 + $0xc8] sm:$0xff]  ;;  %v3081_v20 = vpack.c.bf16 %v95_v17, %v91_v16  ;;  %v99_v22 = vld [vmem:[#allocation6 + $0xc0] sm:$0xff]  ;;  %v90_v55 = vld [vmem:[#allocation6 + $0x78] sm:$0xff] }
  0x3f   :  { %v104_v19 = vld [vmem:[#allocation6 + $0xe8] sm:$0xff]  ;;  %v103_v23 = vld [vmem:[#allocation6 + $0xe0] sm:$0xff]  ;;  %v3136_v58 = vpack.c.bf16 %v90_v55, %v86_v54  ;;  %v85_v59 = vld [vmem:[#allocation6 + $0x50] sm:$0xff] }
  0x40   :  { %v3085_v21 = vpack.c.bf16 %v104_v19, %v100_v18  ;;  %v108_v24 = vld [vmem:[#allocation6 + $0x108] sm:$0xff]  ;;  %v3089_v26 = vpack.c.bf16 %v103_v23, %v99_v22  ;;  %v107_v28 = vld [vmem:[#allocation6 + $0x100] sm:$0xff]  ;;  %v89_v60 = vld [vmem:[#allocation6 + $0x70] sm:$0xff] }
  0x41   :  { %2192 = vmatpush1.bf16.msra.mxu1 %v3073_v14  ;;  %2256 = vmatpush1.bf16.msra.mxu0 %v3073_v14  ;;  %v112_v25 = vld [vmem:[#allocation6 + $0x128] sm:$0xff]  ;;  %v111_v29 = vld [vmem:[#allocation6 + $0x120] sm:$0xff]  ;;  %v94_v61 = vld [vmem:[#allocation6 + $0x98] sm:$0xff]  ;;  %v3140_v63 = vpack.c.bf16 %v89_v60, %v85_v59 }
  0x42   :  { %2194 = vmatprep.subr.bf16.mxu1 %v3077_v15  ;;  %2258 = vmatprep.subr.bf16.mxu0 %v3077_v15  ;;  %v3093_v27 = vpack.c.bf16 %v112_v25, %v108_v24  ;;  %v116_v30 = vld [vmem:[#allocation6 + $0x148] sm:$0xff]  ;;  %v3097_v32 = vpack.c.bf16 %v111_v29, %v107_v28  ;;  %v115_v34 = vld [vmem:[#allocation6 + $0x140] sm:$0xff]  ;;  %v98_v62 = vld [vmem:[#allocation6 + $0xb8] sm:$0xff] }
  0x43   :  { %v120_v31 = vld [vmem:[#allocation6 + $0x168] sm:$0xff]  ;;  %v119_v35 = vld [vmem:[#allocation6 + $0x160] sm:$0xff]  ;;  %v3144_v1 = vpack.c.bf16 %v98_v62, %v94_v61  ;;  %v93_v2 = vld [vmem:[#allocation6 + $0x90] sm:$0xff] }
  0x44   :  { %v3101_v33 = vpack.c.bf16 %v120_v31, %v116_v30  ;;  %v124_v36 = vld [vmem:[#allocation6 + $0x188] sm:$0xff]  ;;  %v3105_v38 = vpack.c.bf16 %v119_v35, %v115_v34  ;;  %v123_v40 = vld [vmem:[#allocation6 + $0x180] sm:$0xff]  ;;  %v97_v3 = vld [vmem:[#allocation6 + $0xb0] sm:$0xff] }
  0x45   :  { %2196 = vmatpush1.bf16.msra.mxu1 %v3081_v20  ;;  %2260 = vmatpush1.bf16.msra.mxu0 %v3081_v20  ;;  %v128_v37 = vld [vmem:[#allocation6 + $0x1a8] sm:$0xff]  ;;  %v127_v41 = vld [vmem:[#allocation6 + $0x1a0] sm:$0xff]  ;;  %v102_v5 = vld [vmem:[#allocation6 + $0xd8] sm:$0xff]  ;;  %v3147_v7 = vpack.c.bf16 %v97_v3, %v93_v2 }
  0x46   :  { %2198 = vmatprep.subr.bf16.mxu1 %v3085_v21  ;;  %2262 = vmatprep.subr.bf16.mxu0 %v3085_v21  ;;  %v3109_v39 = vpack.c.bf16 %v128_v37, %v124_v36  ;;  %v132_v42 = vld [vmem:[#allocation6 + $0x1c8] sm:$0xff]  ;;  %v3113_v44 = vpack.c.bf16 %v127_v41, %v123_v40  ;;  %v131_v46 = vld [vmem:[#allocation6 + $0x1c0] sm:$0xff]  ;;  %v106_v6 = vld [vmem:[#allocation6 + $0xf8] sm:$0xff] }
  0x47   :  { %v136_v43 = vld [vmem:[#allocation6 + $0x1e8] sm:$0xff]  ;;  %v135_v47 = vld [vmem:[#allocation6 + $0x1e0] sm:$0xff]  ;;  %v3150_v10 = vpack.c.bf16 %v106_v6, %v102_v5  ;;  %v101_v11 = vld [vmem:[#allocation6 + $0xd0] sm:$0xff] }
  0x48   :  { %v3117_v45 = vpack.c.bf16 %v136_v43, %v132_v42  ;;  %v3121_v50 = vpack.c.bf16 %v135_v47, %v131_v46  ;;  %v69_v56 = vld [vmem:[%s3565_s4] sm:$0xff]  ;;  %v105_v12 = vld [vmem:[#allocation6 + $0xf0] sm:$0xff]  ;;  %v110_v13 = vld [vmem:[#allocation6 + $0x118] sm:$0xff] }
  0x49   :  { %2200 = vmatpush1.bf16.msra.mxu1 %v3089_v26  ;;  %2264 = vmatpush1.bf16.msra.mxu0 %v3089_v26  ;;  %v114_v16 = vld [vmem:[#allocation6 + $0x138] sm:$0xff]  ;;  %v3153_v17 = vpack.c.bf16 %v105_v12, %v101_v11  ;;  %v109_v19 = vld [vmem:[#allocation6 + $0x110] sm:$0xff]  ;;  %v72_v54 = vld [vmem:[#allocation3 + $0x8] sm:$0xff] }
  0x4a   :  { %2202 = vmatprep.subr.bf16.mxu1 %v3093_v27  ;;  %2266 = vmatprep.subr.bf16.mxu0 %v3093_v27  ;;  %v3156_v18 = vpack.c.bf16 %v114_v16, %v110_v13  ;;  %v113_v22 = vld [vmem:[#allocation6 + $0x130] sm:$0xff]  ;;  %v118_v23 = vld [vmem:[#allocation6 + $0x158] sm:$0xff]  ;;  %v71_v55 = vld [vmem:[#allocation3] sm:$0xff] }
  0x4b   :  { %v122_v24 = vld [vmem:[#allocation6 + $0x178] sm:$0xff]  ;;  %v3159_v25 = vpack.c.bf16 %v113_v22, %v109_v19  ;;  %v117_v29 = vld [vmem:[#allocation6 + $0x150] sm:$0xff]  ;;  %v70_v19 = vld [vmem:[%s3566_s5] sm:$0xff] }
  0x4c   :  { %v3162_v28 = vpack.c.bf16 %v122_v24, %v118_v23  ;;  %v121_v30 = vld [vmem:[#allocation6 + $0x170] sm:$0xff]  ;;  %v126_v31 = vld [vmem:[#allocation6 + $0x198] sm:$0xff] }
  0x4d   :  { %2204 = vmatpush1.bf16.msra.mxu1 %v3097_v32  ;;  %2268 = vmatpush1.bf16.msra.mxu0 %v3097_v32  ;;  %v130_v34 = vld [vmem:[#allocation6 + $0x1b8] sm:$0xff]  ;;  %v3165_v35 = vpack.c.bf16 %v121_v30, %v117_v29  ;;  %v125_v37 = vld [vmem:[#allocation6 + $0x190] sm:$0xff] }
  0x4e   :  { %2206 = vmatprep.subr.bf16.mxu1 %v3101_v33  ;;  %2270 = vmatprep.subr.bf16.mxu0 %v3101_v33  ;;  %v3168_v36 = vpack.c.bf16 %v130_v34, %v126_v31  ;;  %v129_v40 = vld [vmem:[#allocation6 + $0x1b0] sm:$0xff]  ;;  %v134_v41 = vld [vmem:[#allocation6 + $0x1d8] sm:$0xff] }
  0x4f   :  { %v138_v42 = vld [vmem:[#allocation6 + $0x1f8] sm:$0xff]  ;;  %v3171_v43 = vpack.c.bf16 %v129_v40, %v125_v37  ;;  %v133_v47 = vld [vmem:[#allocation6 + $0x1d0] sm:$0xff] }
  0x50   :  { %v3174_v46 = vpack.c.bf16 %v138_v42, %v134_v41  ;;  %v137_v48 = vld [vmem:[#allocation6 + $0x1f0] sm:$0xff]  ;;  %v74_v5 = vld [vmem:[#allocation3 + $0x18] sm:$0xff] }
  0x51   :  { %2208 = vmatpush1.bf16.msra.mxu1 %v3105_v38  ;;  %2272 = vmatpush1.bf16.msra.mxu0 %v3105_v38  ;;  %v3177_v49 = vpack.c.bf16 %v137_v48, %v133_v47  ;;  %v73_v60 = vld [vmem:[#allocation3 + $0x10] sm:$0xff] }
  0x52   :  { %2210 = vmatprep.subr.bf16.mxu1 %v3109_v39  ;;  %2274 = vmatprep.subr.bf16.mxu0 %v3109_v39 }
  0x55   :  { %2212 = vmatpush1.bf16.msra.mxu1 %v3113_v44  ;;  %2276 = vmatpush1.bf16.msra.mxu0 %v3113_v44 }
  0x56   :  { %2214 = vmatprep.subr.bf16.mxu1 %v3117_v45  ;;  %2278 = vmatprep.subr.bf16.mxu0 %v3117_v45 }
  0x59   :  { %2216 = vmatpush1.bf16.msra.mxu1 %v3121_v50  ;;  %2280 = vmatpush1.bf16.msra.mxu0 %v3121_v50 }
  0x5a   :  { %2218 = vmatprep.subr.bf16.mxu1 %v3125_v51  ;;  %2314 = vmatprep.subr.bf16.mxu0 %v3064_v4 }
  0x5c   :  { %204 = vmatmul.mubr.f32.vlgmr.msra.gmra.mrb[0].mxu1 %v69_v56 }
  0x5d   :  { %2220 = vmatpush1.bf16.msra.mxu1 %v3132_v57  ;;  %274 = vmatprep.mubr.f32.mxu1 %v2967_v0 }
  0x5e   :  { %2222 = vmatprep.subr.bf16.mxu1 %v3136_v58 }
  0x61   :  { %2224 = vmatpush1.bf16.msra.mxu1 %v3140_v63 }
  0x62   :  { %2226 = vmatprep.subr.bf16.mxu1 %v3144_v1 }
  0x65   :  { %2228 = vmatpush1.bf16.msra.mxu1 %v3147_v7 }
  0x66   :  { %2230 = vmatprep.subr.bf16.mxu1 %v3150_v10 }
  0x69   :  { %2232 = vmatpush1.bf16.msra.mxu1 %v3153_v17 }
  0x6a   :  { %2234 = vmatprep.subr.bf16.mxu1 %v3156_v18 }
  0x6d   :  { %2236 = vmatpush1.bf16.msra.mxu1 %v3159_v25 }
  0x6e   :  { %2238 = vmatprep.subr.bf16.mxu1 %v3162_v28 }
  0x71   :  { %2240 = vmatpush1.bf16.msra.mxu1 %v3165_v35 }
  0x72   :  { %2242 = vmatprep.subr.bf16.mxu1 %v3168_v36 }
  0x75   :  { %2244 = vmatpush1.bf16.msra.mxu1 %v3171_v43 }
  0x76   :  { %2246 = vmatprep.subr.bf16.mxu1 %v3174_v46 }
  0x79   :  { %2248 = vmatpush1.bf16.msra.mxu1 %v3177_v49 }
  0x7a   :  { %2282 = vmatprep.subr.bf16.mxu1 %v3125_v51 }
  0x7c   :  { %275 = vmatmul.mubr.f32.vlgmr.msra.gmra.mrb[2].mxu1 %v69_v56 }
  0x7d   :  { %2284 = vmatpush1.bf16.msra.mxu1 %v3132_v57  ;;  %505 = vmatprep.mubr.f32.mxu1 %v2967_v0 }
  0x7e   :  { %2286 = vmatprep.subr.bf16.mxu1 %v3136_v58 }
  0x81   :  { %2288 = vmatpush1.bf16.msra.mxu1 %v3140_v63 }
  0x82   :  { %2290 = vmatprep.subr.bf16.mxu1 %v3144_v1 }
  0x85   :  { %2292 = vmatpush1.bf16.msra.mxu1 %v3147_v7 }
  0x86   :  { %2294 = vmatprep.subr.bf16.mxu1 %v3150_v10 }
  0x89   :  { %2296 = vmatpush1.bf16.msra.mxu1 %v3153_v17 }
  0x8a   :  { %2298 = vmatprep.subr.bf16.mxu1 %v3156_v18 }
  0x8d   :  { %2300 = vmatpush1.bf16.msra.mxu1 %v3159_v25 }
  0x8e   :  { %2302 = vmatprep.subr.bf16.mxu1 %v3162_v28 }
  0x91   :  { %2304 = vmatpush1.bf16.msra.mxu1 %v3165_v35 }
  0x92   :  { %2306 = vmatprep.subr.bf16.mxu1 %v3168_v36 }
  0x95   :  { %2308 = vmatpush1.bf16.msra.mxu1 %v3171_v43 }
  0x96   :  { %2310 = vmatprep.subr.bf16.mxu1 %v3174_v46 }
  0x99   :  { %2312 = vmatpush1.bf16.msra.mxu1 %v3177_v49 }
  0x9a   :  { %2346 = vmatprep.subr.bf16.mxu1 %v3125_v51 }
 0x12f   :  { %v205_v52 = vpop.f32.mrb[0].mxu1 }
 0x130   :  { %v207_v53 = vpop.f32.mrb[1].mxu1  ;;  %v281_v59 = vadd.f32 %v205_v52, %v71_v55 }
 0x131   :  { %v282_v56 = vadd.f32 %v207_v53, %v72_v54 }
 0x133   :  { %2740 = vtanh.f32 %v282_v56 }
 0x134   :  { %2742 = vtanh.f32 %v281_v59 }
 0x13d   :  { %v2741_v3 = vpop.eup %2740 }
 0x13e   :  { %v2743_v6 = vpop.eup %2742  ;;  %v291_v11 = vmul.f32 0.5, %v2741_v3 }
 0x13f   :  { %v289_v13 = vmul.f32 0.5, %v2743_v6 }
 0x140   :  { %v292_v16 = vadd.f32 0.5, %v291_v11 }
 0x141   :  { %v290_v22 = vadd.f32 0.5, %v289_v13 }
 0x142   :  { %v295_v24 = vmul.f32 %v292_v16, %v70_v19  ;;  %v536_v16 = vld [vmem:[#allocation3 + $0x50] sm:$0xff] }
 0x14f   :  { %v276_v61 = vpop.f32.mrb[2].mxu1 }
 0x150   :  { %v283_v62 = vadd.f32 %v276_v61, %v73_v60  ;;  %v278_v2 = vpop.f32.mrb[3].mxu1 }
 0x151   :  { %v284_v12 = vadd.f32 %v278_v2, %v74_v5 }
 0x152   :  { %2744 = vtanh.f32 %v283_v62 }
 0x153   :  { %2746 = vtanh.f32 %v284_v12 }
 0x15c   :  { %v2745_v23 = vpop.eup %2744 }
 0x15d   :  { %v296_v29 = vmul.f32 %v2745_v23, %v290_v22  ;;  %v2747_v31 = vpop.eup %2746 }
 0x15e   :  { %v293_v34 = vmul.f32 0.5, %v2747_v31  ;;  %v537_v31 = vld [vmem:[#allocation3 + $0x58] sm:$0xff] }
 0x15f   :  { %v3202_v30 = vadd.f32 %v296_v29, %v295_v24 }
 0x160   :  { %v294_v37 = vadd.f32 0.5, %v293_v34 }
 0x161   :  { %2748 = vtanh.f32 %v3202_v30 }
 0x16b   :  { %v2749_v40 = vpop.eup %2748 }
 0x16c   :  { %v3205_v41 = vmul.f32 %v2749_v40, %v294_v37 }
 0x16e   :  { %435 = vmatmul.mubr.f32.vlgmr.msra.gmra.mrb[0].mxu0 %v3205_v41  ;;  %506 = vmatmul.mubr.f32.vlgmr.msra.gmra.mrb[4].mxu1 %v3205_v41 }
 0x16f   :  { %2316 = vmatpush1.bf16.msra.mxu0 %v3066_v8  ;;  %2348 = vmatpush1.bf16.msra.mxu1 %v3132_v57 }
 0x170   :  { %2318 = vmatprep.subr.bf16.mxu0 %v3068_v9  ;;  %2350 = vmatprep.subr.bf16.mxu1 %v3136_v58 }
 0x171   :  { %666 = vmatprep.mubr.f32.mxu0 %v2967_v0  ;;  %737 = vmatprep.mubr.f32.mxu1 %v2967_v0 }
 0x173   :  { %2320 = vmatpush1.bf16.msra.mxu0 %v3073_v14  ;;  %2352 = vmatpush1.bf16.msra.mxu1 %v3140_v63 }
 0x174   :  { %2322 = vmatprep.subr.bf16.mxu0 %v3077_v15  ;;  %2354 = vmatprep.subr.bf16.mxu1 %v3144_v1 }
 0x177   :  { %2324 = vmatpush1.bf16.msra.mxu0 %v3081_v20  ;;  %2356 = vmatpush1.bf16.msra.mxu1 %v3147_v7 }
 0x178   :  { %2326 = vmatprep.subr.bf16.mxu0 %v3085_v21  ;;  %2358 = vmatprep.subr.bf16.mxu1 %v3150_v10 }
 0x17b   :  { %2328 = vmatpush1.bf16.msra.mxu0 %v3089_v26  ;;  %2360 = vmatpush1.bf16.msra.mxu1 %v3153_v17 }
 0x17c   :  { %2330 = vmatprep.subr.bf16.mxu0 %v3093_v27  ;;  %2362 = vmatprep.subr.bf16.mxu1 %v3156_v18 }
 0x17f   :  { %2332 = vmatpush1.bf16.msra.mxu0 %v3097_v32  ;;  %2364 = vmatpush1.bf16.msra.mxu1 %v3159_v25  ;;  %v302_v32 = vld [vmem:[#allocation3 + $0x20] sm:$0xff] }
 0x180   :  { %2334 = vmatprep.subr.bf16.mxu0 %v3101_v33  ;;  %2366 = vmatprep.subr.bf16.mxu1 %v3162_v28  ;;  %v303_v33 = vld [vmem:[#allocation3 + $0x28] sm:$0xff] }
 0x183   :  { %2336 = vmatpush1.bf16.msra.mxu0 %v3105_v38  ;;  %2368 = vmatpush1.bf16.msra.mxu1 %v3165_v35 }
 0x184   :  { %2338 = vmatprep.subr.bf16.mxu0 %v3109_v39  ;;  %2370 = vmatprep.subr.bf16.mxu1 %v3168_v36  ;;  %v304_v39 = vld [vmem:[#allocation3 + $0x30] sm:$0xff] }
 0x187   :  { %2340 = vmatpush1.bf16.msra.mxu0 %v3113_v44  ;;  %2372 = vmatpush1.bf16.msra.mxu1 %v3171_v43 }
 0x188   :  { %2342 = vmatprep.subr.bf16.mxu0 %v3117_v45  ;;  %2374 = vmatprep.subr.bf16.mxu1 %v3174_v46 }
 0x18b   :  { %2344 = vmatpush1.bf16.msra.mxu0 %v3121_v50  ;;  %2376 = vmatpush1.bf16.msra.mxu1 %v3177_v49  ;;  %v305_v50 = vld [vmem:[#allocation3 + $0x38] sm:$0xff] }
 0x18c   :  { %2378 = vmatprep.subr.bf16.mxu0 %v3064_v4  ;;  %2410 = vmatprep.subr.bf16.mxu1 %v3125_v51 }
 0x241   :  { %v436_v38 = vpop.f32.mrb[0].mxu0  ;;  %v507_v42 = vpop.f32.mrb[4].mxu1 }
 0x242   :  { %v512_v44 = vadd.f32 %v436_v38, %v302_v32  ;;  %v438_v47 = vpop.f32.mrb[1].mxu0  ;;  %v509_v48 = vpop.f32.mrb[5].mxu1  ;;  %v514_v45 = vadd.f32 %v507_v42, %v304_v39 }
 0x243   :  { %v513_v52 = vadd.f32 %v438_v47, %v303_v33  ;;  %v515_v53 = vadd.f32 %v509_v48, %v305_v50 }
 0x244   :  { %2750 = vtanh.f32 %v512_v44 }
 0x245   :  { %2752 = vtanh.f32 %v513_v52 }
 0x246   :  { %2754 = vtanh.f32 %v514_v45 }
 0x247   :  { %2756 = vtanh.f32 %v515_v53 }
 0x24e   :  { %v2751_v54 = vpop.eup %2750 }
 0x24f   :  { %v520_v55 = vmul.f32 0.5, %v2751_v54  ;;  %v2753_v4 = vpop.eup %2752 }
 0x250   :  { %v522_v51 = vmul.f32 0.5, %v2753_v4  ;;  %v2755_v59 = vpop.eup %2754  ;;  %v1007_v4 = vld [vmem:[#allocation6 + $0x28] sm:$0xff] }
 0x251   :  { %v521_v56 = vadd.f32 0.5, %v520_v55  ;;  %v2757_v3 = vpop.eup %2756  ;;  %v1003_v55 = vld [vmem:[#allocation6 + $0x8] sm:$0xff] }
 0x252   :  { %v523_v60 = vadd.f32 0.5, %v522_v51  ;;  %v524_v5 = vmul.f32 0.5, %v2757_v3  ;;  %v3307_v51 = vpack.c.bf16 %v1007_v4, %v1003_v55  ;;  %v1004_v3 = vld [vmem:[#allocation6 + $0x10] sm:$0xff]  ;;  %v1041_v55 = vld [vmem:[#allocation6 + $0x138] sm:$0xff] }
 0x253   :  { %v527_v61 = vmul.f32 %v2755_v59, %v521_v56  ;;  %v1005_v56 = vld [vmem:[#allocation6 + $0x18] sm:$0xff]  ;;  %v1036_v4 = vld [vmem:[#allocation6 + $0x110] sm:$0xff] }
 0x254   :  { %v526_v62 = vmul.f32 %v523_v60, %v3202_v30  ;;  %v525_v6 = vadd.f32 0.5, %v524_v5  ;;  %v1009_v59 = vld [vmem:[#allocation6 + $0x38] sm:$0xff]  ;;  %v1002_v60 = vld [vmem:[#allocation6] sm:$0xff]  ;;  %v1008_v5 = vld [vmem:[#allocation6 + $0x30] sm:$0xff] }
 0x256   :  { %v3244_v2 = vadd.f32 %v527_v61, %v526_v62  ;;  %v1006_v61 = vld [vmem:[#allocation6 + $0x20] sm:$0xff]  ;;  %v3309_v62 = vpack.c.bf16 %v1009_v59, %v1005_v56  ;;  %v1040_v56 = vld [vmem:[#allocation6 + $0x130] sm:$0xff] }
 0x258   :  { %2758 = vtanh.f32 %v3244_v2 }
 0x262   :  { %v2759_v11 = vpop.eup %2758 }
 0x263   :  { %v3247_v12 = vmul.f32 %v2759_v11, %v525_v6  ;;  %v3314_v6 = vpack.c.bf16 %v1008_v5, %v1004_v3  ;;  %v1011_v11 = vld [vmem:[#allocation6 + $0x48] sm:$0xff]  ;;  %v1049_v3 = vld [vmem:[#allocation6 + $0x178] sm:$0xff] }
 0x265   :  { %667 = vmatmul.mubr.f32.vlgmr.msra.gmra.mrb[2].mxu0 %v3247_v12  ;;  %738 = vmatmul.mubr.f32.vlgmr.msra.gmra.mrb[6].mxu1 %v3247_v12 }
 0x266   :  { %2380 = vmatpush1.bf16.msra.mxu0 %v3066_v8  ;;  %2412 = vmatpush1.bf16.msra.mxu1 %v3132_v57  ;;  %v802_v8 = vld [vmem:[#allocation6 + $0x100] sm:$0xff] }
 0x267   :  { %2382 = vmatprep.subr.bf16.mxu0 %v3068_v9  ;;  %2414 = vmatprep.subr.bf16.mxu1 %v3136_v58  ;;  %v806_v9 = vld [vmem:[#allocation6 + $0x120] sm:$0xff]  ;;  %v819_v58 = vld [vmem:[#allocation6 + $0x188] sm:$0xff] }
 0x268   :  { %898 = vmatprep.mubr.f32.mxu0 %v2967_v0  ;;  %969 = vmatprep.mubr.f32.mxu1 %v2967_v0 }
 0x26a   :  { %2384 = vmatpush1.bf16.msra.mxu0 %v3073_v14  ;;  %2416 = vmatpush1.bf16.msra.mxu1 %v3140_v63  ;;  %v3276_v14 = vpack.c.bf16 %v806_v9, %v802_v8  ;;  %v823_v63 = vld [vmem:[#allocation6 + $0x1a8] sm:$0xff]  ;;  %v1013_v9 = vld [vmem:[#allocation6 + $0x58] sm:$0xff] }
 0x26b   :  { %2386 = vmatprep.subr.bf16.mxu0 %v3077_v15  ;;  %2418 = vmatprep.subr.bf16.mxu1 %v3144_v1  ;;  %v811_v15 = vld [vmem:[#allocation6 + $0x148] sm:$0xff]  ;;  %v3285_v1 = vpack.c.bf16 %v823_v63, %v819_v58 }
 0x26c   :  { %v1015_v8 = vld [vmem:[#allocation6 + $0x68] sm:$0xff] }
 0x26e   :  { %2388 = vmatpush1.bf16.msra.mxu0 %v3081_v20  ;;  %2420 = vmatpush1.bf16.msra.mxu1 %v3147_v7  ;;  %v815_v20 = vld [vmem:[#allocation6 + $0x168] sm:$0xff]  ;;  %v818_v7 = vld [vmem:[#allocation6 + $0x180] sm:$0xff] }
 0x26f   :  { %2390 = vmatprep.subr.bf16.mxu0 %v3085_v21  ;;  %2422 = vmatprep.subr.bf16.mxu1 %v3150_v10  ;;  %v3279_v21 = vpack.c.bf16 %v815_v20, %v811_v15  ;;  %v822_v10 = vld [vmem:[#allocation6 + $0x1a0] sm:$0xff]  ;;  %v3319_v15 = vpack.c.bf16 %v1015_v8, %v1011_v11  ;;  %v1017_v20 = vld [vmem:[#allocation6 + $0x78] sm:$0xff]  ;;  %v1044_v11 = vld [vmem:[#allocation6 + $0x150] sm:$0xff] }
 0x270   :  { %v3321_v58 = vpack.c.bf16 %v1017_v20, %v1013_v9  ;;  %v1048_v8 = vld [vmem:[#allocation6 + $0x170] sm:$0xff]  ;;  %v1053_v20 = vld [vmem:[#allocation6 + $0x198] sm:$0xff] }
 0x271   :  { %v3368_v9 = vpack.c.bf16 %v1048_v8, %v1044_v11 }
 0x272   :  { %2392 = vmatpush1.bf16.msra.mxu0 %v3089_v26  ;;  %2424 = vmatpush1.bf16.msra.mxu1 %v3153_v17  ;;  %v810_v26 = vld [vmem:[#allocation6 + $0x140] sm:$0xff]  ;;  %v3287_v17 = vpack.c.bf16 %v822_v10, %v818_v7  ;;  %v1012_v7 = vld [vmem:[#allocation6 + $0x50] sm:$0xff] }
 0x273   :  { %2394 = vmatprep.subr.bf16.mxu0 %v3093_v27  ;;  %2426 = vmatprep.subr.bf16.mxu1 %v3156_v18  ;;  %v814_v27 = vld [vmem:[#allocation6 + $0x160] sm:$0xff]  ;;  %v827_v18 = vld [vmem:[#allocation6 + $0x1c8] sm:$0xff]  ;;  %v1016_v10 = vld [vmem:[#allocation6 + $0x70] sm:$0xff] }
 0x274   :  { %v3281_v57 = vpack.c.bf16 %v814_v27, %v810_v26  ;;  %v1010_v26 = vld [vmem:[#allocation6 + $0x40] sm:$0xff] }
 0x275   :  { %v1014_v27 = vld [vmem:[#allocation6 + $0x60] sm:$0xff] }
 0x276   :  { %2428 = vmatpush1.bf16.msra.mxu1 %v3159_v25  ;;  %2396 = vmatpush1.bf16.msra.mxu0 %v3276_v14  ;;  %v831_v25 = vld [vmem:[#allocation6 + $0x1e8] sm:$0xff]  ;;  %v3323_v63 = vpack.c.bf16 %v1014_v27, %v1010_v26  ;;  %v1057_v26 = vld [vmem:[#allocation6 + $0x1b8] sm:$0xff] }
 0x277   :  { %2430 = vmatprep.subr.bf16.mxu1 %v3162_v28  ;;  %2398 = vmatprep.subr.bf16.mxu0 %v3279_v21  ;;  %v3291_v28 = vpack.c.bf16 %v831_v25, %v827_v18  ;;  %v3326_v18 = vpack.c.bf16 %v1016_v10, %v1012_v7  ;;  %v1019_v25 = vld [vmem:[#allocation6 + $0x88] sm:$0xff]  ;;  %v3374_v27 = vpack.c.bf16 %v1057_v26, %v1053_v20  ;;  %v1052_v7 = vld [vmem:[#allocation6 + $0x190] sm:$0xff] }
 0x278   :  { %v1056_v10 = vld [vmem:[#allocation6 + $0x1b0] sm:$0xff] }
 0x27a   :  { %2432 = vmatpush1.bf16.msra.mxu1 %v3165_v35  ;;  %2400 = vmatpush1.bf16.msra.mxu0 %v3281_v57  ;;  %v826_v35 = vld [vmem:[#allocation6 + $0x1c0] sm:$0xff] }
 0x27b   :  { %2434 = vmatprep.subr.bf16.mxu1 %v3168_v36  ;;  %2402 = vmatprep.subr.bf16.mxu0 %v3285_v1  ;;  %v830_v36 = vld [vmem:[#allocation6 + $0x1e0] sm:$0xff] }
 0x27e   :  { %2436 = vmatpush1.bf16.msra.mxu1 %v3171_v43  ;;  %2404 = vmatpush1.bf16.msra.mxu0 %v3287_v17  ;;  %v3293_v43 = vpack.c.bf16 %v830_v36, %v826_v35  ;;  %v1023_v35 = vld [vmem:[#allocation6 + $0xa8] sm:$0xff]  ;;  %v1021_v36 = vld [vmem:[#allocation6 + $0x98] sm:$0xff] }
 0x27f   :  { %2438 = vmatprep.subr.bf16.mxu1 %v3174_v46  ;;  %2406 = vmatprep.subr.bf16.mxu0 %v3291_v28  ;;  %v534_v46 = vld [vmem:[#allocation3 + $0x40] sm:$0xff] }
 0x282   :  { %2440 = vmatpush1.bf16.msra.mxu1 %v3177_v49  ;;  %2408 = vmatpush1.bf16.msra.mxu0 %v3293_v43  ;;  %v535_v49 = vld [vmem:[#allocation3 + $0x48] sm:$0xff] }
 0x283   :  { %2442 = vmatprep.subr.bf16.mxu0 %v3307_v51  ;;  %2474 = vmatprep.subr.bf16.mxu1 %v3309_v62 }
 0x338   :  { %v668_v13 = vpop.f32.mrb[2].mxu0  ;;  %v739_v19 = vpop.f32.mrb[6].mxu1 }
 0x339   :  { %v744_v22 = vadd.f32 %v668_v13, %v534_v46  ;;  %v670_v23 = vpop.f32.mrb[3].mxu0  ;;  %v741_v24 = vpop.f32.mrb[7].mxu1  ;;  %v746_v30 = vadd.f32 %v739_v19, %v536_v16  ;;  %v3331_v46 = vpack.c.bf16 %v1023_v35, %v1019_v25  ;;  %v1018_v13 = vld [vmem:[#allocation6 + $0x80] sm:$0xff]  ;;  %v3376_v25 = vpack.c.bf16 %v1056_v10, %v1052_v7  ;;  %v1061_v35 = vld [vmem:[#allocation6 + $0x1d8] sm:$0xff] }
 0x33a   :  { %v745_v29 = vadd.f32 %v670_v23, %v535_v49  ;;  %v747_v34 = vadd.f32 %v741_v24, %v537_v31  ;;  %v1025_v49 = vld [vmem:[#allocation6 + $0xb8] sm:$0xff]  ;;  %v1022_v16 = vld [vmem:[#allocation6 + $0xa0] sm:$0xff]  ;;  %v1020_v23 = vld [vmem:[#allocation6 + $0x90] sm:$0xff] }
 0x33b   :  { %2760 = vtanh.f32 %v744_v22  ;;  %v3333_v19 = vpack.c.bf16 %v1025_v49, %v1021_v36  ;;  %v3335_v22 = vpack.c.bf16 %v1022_v16, %v1018_v13  ;;  %v1024_v24 = vld [vmem:[#allocation6 + $0xb0] sm:$0xff]  ;;  %v1031_v31 = vld [vmem:[#allocation6 + $0xe8] sm:$0xff]  ;;  %v1065_v36 = vld [vmem:[#allocation6 + $0x1f8] sm:$0xff] }
 0x33c   :  { %2762 = vtanh.f32 %v745_v29  ;;  %v3338_v29 = vpack.c.bf16 %v1024_v24, %v1020_v23  ;;  %v3382_v49 = vpack.c.bf16 %v1065_v36, %v1061_v35  ;;  %v1060_v13 = vld [vmem:[#allocation6 + $0x1d0] sm:$0xff]  ;;  %v766_v24 = vld [vmem:[#allocation3 + $0x60] sm:$0xff] }
 0x33d   :  { %2764 = vtanh.f32 %v746_v30  ;;  %v1027_v30 = vld [vmem:[#allocation6 + $0xc8] sm:$0xff]  ;;  %v1064_v16 = vld [vmem:[#allocation6 + $0x1f0] sm:$0xff] }
 0x33e   :  { %2766 = vtanh.f32 %v747_v34  ;;  %v1029_v34 = vld [vmem:[#allocation6 + $0xd8] sm:$0xff]  ;;  %v3384_v23 = vpack.c.bf16 %v1064_v16, %v1060_v13 }
 0x345   :  { %v2761_v37 = vpop.eup %2760 }
 0x346   :  { %v752_v40 = vmul.f32 0.5, %v2761_v37  ;;  %v2763_v32 = vpop.eup %2762  ;;  %v3343_v37 = vpack.c.bf16 %v1031_v31, %v1027_v30  ;;  %v767_v30 = vld [vmem:[#allocation3 + $0x68] sm:$0xff] }
 0x347   :  { %v754_v38 = vmul.f32 0.5, %v2763_v32  ;;  %v2765_v39 = vpop.eup %2764  ;;  %v1026_v32 = vld [vmem:[#allocation6 + $0xc0] sm:$0xff] }
 0x348   :  { %v753_v33 = vadd.f32 0.5, %v752_v40  ;;  %v2767_v52 = vpop.eup %2766  ;;  %v1033_v40 = vld [vmem:[#allocation6 + $0xf8] sm:$0xff] }
 0x349   :  { %v755_v42 = vadd.f32 0.5, %v754_v38  ;;  %v756_v45 = vmul.f32 0.5, %v2767_v52  ;;  %v3345_v38 = vpack.c.bf16 %v1033_v40, %v1029_v34  ;;  %v1035_v52 = vld [vmem:[#allocation6 + $0x108] sm:$0xff]  ;;  %v768_v34 = vld [vmem:[#allocation3 + $0x70] sm:$0xff] }
 0x34a   :  { %v759_v44 = vmul.f32 %v2765_v39, %v753_v33  ;;  %v1030_v33 = vld [vmem:[#allocation6 + $0xe0] sm:$0xff] }
 0x34b   :  { %v758_v47 = vmul.f32 %v755_v42, %v3244_v2  ;;  %v757_v50 = vadd.f32 0.5, %v756_v45  ;;  %v3311_v2 = vpack.c.bf16 %v1006_v61, %v1002_v60  ;;  %v3347_v39 = vpack.c.bf16 %v1030_v33, %v1026_v32  ;;  %v1028_v42 = vld [vmem:[#allocation6 + $0xd0] sm:$0xff]  ;;  %v1039_v45 = vld [vmem:[#allocation6 + $0x128] sm:$0xff]  ;;  %v1045_v61 = vld [vmem:[#allocation6 + $0x158] sm:$0xff] }
 0x34c   :  { %v3359_v60 = vpack.c.bf16 %v1040_v56, %v1036_v4  ;;  %v3366_v5 = vpack.c.bf16 %v1049_v3, %v1045_v61 }
 0x34d   :  { %v3298_v48 = vadd.f32 %v759_v44, %v758_v47  ;;  %v1032_v44 = vld [vmem:[#allocation6 + $0xf0] sm:$0xff] }
 0x34e   :  { %v3350_v47 = vpack.c.bf16 %v1032_v44, %v1028_v42 }
 0x34f   :  { %2768 = vtanh.f32 %v3298_v48 }
 0x359   :  { %v2769_v53 = vpop.eup %2768 }
 0x35a   :  { %v3301_v54 = vmul.f32 %v2769_v53, %v757_v50  ;;  %v1037_v50 = vld [vmem:[#allocation6 + $0x118] sm:$0xff]  ;;  %v3355_v53 = vpack.c.bf16 %v1039_v45, %v1035_v52 }
 0x35b   :  { %v3357_v59 = vpack.c.bf16 %v1041_v55, %v1037_v50  ;;  %v769_v45 = vld [vmem:[#allocation3 + $0x78] sm:$0xff] }
 0x35c   :  { %899 = vmatmul.mubr.f32.vlgmr.msra.gmra.mrb[4].mxu0 %v3301_v54  ;;  %970 = vmatmul.mubr.f32.vlgmr.msra.gmra.mrb[8].mxu1 %v3301_v54 }
 0x35d   :  { %1130 = vmatprep.mubr.f32.mxu0 %v2967_v0  ;;  %1201 = vmatprep.mubr.f32.mxu1 %v2967_v0 }
 0x35e   :  { %2444 = vmatpush1.bf16.msra.mxu0 %v3311_v2  ;;  %2476 = vmatpush1.bf16.msra.mxu1 %v3314_v6 }
 0x35f   :  { %2446 = vmatprep.subr.bf16.mxu0 %v3319_v15  ;;  %2478 = vmatprep.subr.bf16.mxu1 %v3321_v58 }
 0x362   :  { %2448 = vmatpush1.bf16.msra.mxu0 %v3323_v63  ;;  %2480 = vmatpush1.bf16.msra.mxu1 %v3326_v18 }
 0x363   :  { %2450 = vmatprep.subr.bf16.mxu0 %v3331_v46  ;;  %2482 = vmatprep.subr.bf16.mxu1 %v3333_v19 }
 0x366   :  { %2452 = vmatpush1.bf16.msra.mxu0 %v3335_v22  ;;  %2484 = vmatpush1.bf16.msra.mxu1 %v3338_v29 }
 0x367   :  { %2454 = vmatprep.subr.bf16.mxu0 %v3343_v37  ;;  %2486 = vmatprep.subr.bf16.mxu1 %v3345_v38 }
 0x36a   :  { %2456 = vmatpush1.bf16.msra.mxu0 %v3347_v39  ;;  %2488 = vmatpush1.bf16.msra.mxu1 %v3350_v47 }
 0x36b   :  { %2458 = vmatprep.subr.bf16.mxu0 %v3355_v53  ;;  %2490 = vmatprep.subr.bf16.mxu1 %v3357_v59 }
 0x36e   :  { %2460 = vmatpush1.bf16.msra.mxu0 %v3276_v14  ;;  %2492 = vmatpush1.bf16.msra.mxu1 %v3359_v60 }
 0x36f   :  { %2462 = vmatprep.subr.bf16.mxu0 %v3279_v21  ;;  %2494 = vmatprep.subr.bf16.mxu1 %v3366_v5 }
 0x372   :  { %2464 = vmatpush1.bf16.msra.mxu0 %v3281_v57  ;;  %2496 = vmatpush1.bf16.msra.mxu1 %v3368_v9 }
 0x373   :  { %2466 = vmatprep.subr.bf16.mxu0 %v3285_v1  ;;  %2498 = vmatprep.subr.bf16.mxu1 %v3374_v27 }
 0x376   :  { %2468 = vmatpush1.bf16.msra.mxu0 %v3287_v17  ;;  %2500 = vmatpush1.bf16.msra.mxu1 %v3376_v25 }
 0x377   :  { %2470 = vmatprep.subr.bf16.mxu0 %v3291_v28  ;;  %2502 = vmatprep.subr.bf16.mxu1 %v3382_v49 }
 0x37a   :  { %2472 = vmatpush1.bf16.msra.mxu0 %v3293_v43  ;;  %2504 = vmatpush1.bf16.msra.mxu1 %v3384_v23 }
 0x37b   :  { %2506 = vmatprep.subr.bf16.mxu0 %v3307_v51  ;;  %2538 = vmatprep.subr.bf16.mxu1 %v3309_v62 }
 0x42f   :  { %v900_v31 = vpop.f32.mrb[4].mxu0  ;;  %v971_v40 = vpop.f32.mrb[8].mxu1 }
 0x430   :  { %v976_v32 = vadd.f32 %v900_v31, %v766_v24  ;;  %v902_v33 = vpop.f32.mrb[5].mxu0  ;;  %v973_v42 = vpop.f32.mrb[9].mxu1  ;;  %v978_v52 = vadd.f32 %v971_v40, %v768_v34  ;;  %v999_v24 = vld [vmem:[#allocation3 + $0x88] sm:$0xff]  ;;  %v1000_v31 = vld [vmem:[#allocation3 + $0x90] sm:$0xff] }
 0x431   :  { %v977_v44 = vadd.f32 %v902_v33, %v767_v30  ;;  %v979_v50 = vadd.f32 %v973_v42, %v769_v45 }
 0x432   :  { %2770 = vtanh.f32 %v976_v32 }
 0x433   :  { %2772 = vtanh.f32 %v977_v44 }
 0x434   :  { %2774 = vtanh.f32 %v978_v52  ;;  %v1001_v52 = vld [vmem:[#allocation3 + $0x98] sm:$0xff] }
 0x435   :  { %2776 = vtanh.f32 %v979_v50 }
 0x43c   :  { %v2771_v55 = vpop.eup %2770 }
 0x43d   :  { %v984_v4 = vmul.f32 0.5, %v2771_v55  ;;  %v2773_v56 = vpop.eup %2772 }
 0x43e   :  { %v986_v3 = vmul.f32 0.5, %v2773_v56  ;;  %v2775_v11 = vpop.eup %2774 }
 0x43f   :  { %v985_v61 = vadd.f32 0.5, %v984_v4  ;;  %v2777_v10 = vpop.eup %2776 }
 0x440   :  { %v987_v8 = vadd.f32 0.5, %v986_v3  ;;  %v988_v35 = vmul.f32 0.5, %v2777_v10 }
 0x441   :  { %v991_v20 = vmul.f32 %v2775_v11, %v985_v61 }
 0x442   :  { %v990_v26 = vmul.f32 %v987_v8, %v3298_v48  ;;  %v989_v36 = vadd.f32 0.5, %v988_v35  ;;  %v998_v48 = vld [vmem:[#allocation3 + $0x80] sm:$0xff] }
 0x444   :  { %v3392_v7 = vadd.f32 %v991_v20, %v990_v26 }
 0x446   :  { %2778 = vtanh.f32 %v3392_v7 }
 0x450   :  { %v2779_v13 = vpop.eup %2778 }
 0x451   :  { %v3395_v16 = vmul.f32 %v2779_v13, %v989_v36 }
 0x453   :  { %1131 = vmatmul.mubr.f32.vlgmr.msra.gmra.mrb[6].mxu0 %v3395_v16  ;;  %1202 = vmatmul.mubr.f32.vlgmr.msra.gmra.mrb[10].mxu1 %v3395_v16 }
 0x454   :  { %2508 = vmatpush1.bf16.msra.mxu0 %v3311_v2  ;;  %2540 = vmatpush1.bf16.msra.mxu1 %v3314_v6 }
 0x455   :  { %2510 = vmatprep.subr.bf16.mxu0 %v3319_v15  ;;  %2542 = vmatprep.subr.bf16.mxu1 %v3321_v58 }
 0x456   :  { %1362 = vmatprep.mubr.f32.mxu0 %v2967_v0  ;;  %1433 = vmatprep.mubr.f32.mxu1 %v2967_v0 }
 0x458   :  { %2512 = vmatpush1.bf16.msra.mxu0 %v3323_v63  ;;  %2544 = vmatpush1.bf16.msra.mxu1 %v3326_v18 }
 0x459   :  { %2514 = vmatprep.subr.bf16.mxu0 %v3331_v46  ;;  %2546 = vmatprep.subr.bf16.mxu1 %v3333_v19 }
 0x45c   :  { %2516 = vmatpush1.bf16.msra.mxu0 %v3335_v22  ;;  %2548 = vmatpush1.bf16.msra.mxu1 %v3338_v29 }
 0x45d   :  { %2518 = vmatprep.subr.bf16.mxu0 %v3343_v37  ;;  %2550 = vmatprep.subr.bf16.mxu1 %v3345_v38 }
 0x460   :  { %2520 = vmatpush1.bf16.msra.mxu0 %v3347_v39  ;;  %2552 = vmatpush1.bf16.msra.mxu1 %v3350_v47 }
 0x461   :  { %2522 = vmatprep.subr.bf16.mxu0 %v3355_v53  ;;  %2554 = vmatprep.subr.bf16.mxu1 %v3357_v59 }
 0x464   :  { %2524 = vmatpush1.bf16.msra.mxu0 %v3276_v14  ;;  %2556 = vmatpush1.bf16.msra.mxu1 %v3359_v60 }
 0x465   :  { %2526 = vmatprep.subr.bf16.mxu0 %v3279_v21  ;;  %2558 = vmatprep.subr.bf16.mxu1 %v3366_v5 }
 0x468   :  { %2528 = vmatpush1.bf16.msra.mxu0 %v3281_v57  ;;  %2560 = vmatpush1.bf16.msra.mxu1 %v3368_v9 }
 0x469   :  { %2530 = vmatprep.subr.bf16.mxu0 %v3285_v1  ;;  %2562 = vmatprep.subr.bf16.mxu1 %v3374_v27 }
 0x46c   :  { %2532 = vmatpush1.bf16.msra.mxu0 %v3287_v17  ;;  %2564 = vmatpush1.bf16.msra.mxu1 %v3376_v25 }
 0x46d   :  { %2534 = vmatprep.subr.bf16.mxu0 %v3291_v28  ;;  %2566 = vmatprep.subr.bf16.mxu1 %v3382_v49 }
 0x470   :  { %2536 = vmatpush1.bf16.msra.mxu0 %v3293_v43  ;;  %2568 = vmatpush1.bf16.msra.mxu1 %v3384_v23 }
 0x471   :  { %2570 = vmatprep.subr.bf16.mxu0 %v3307_v51  ;;  %2602 = vmatprep.subr.bf16.mxu1 %v3309_v62 }
 0x526   :  { %v1132_v30 = vpop.f32.mrb[6].mxu0  ;;  %v1203_v34 = vpop.f32.mrb[10].mxu1 }
 0x527   :  { %v1208_v40 = vadd.f32 %v1132_v30, %v998_v48  ;;  %v1134_v32 = vpop.f32.mrb[7].mxu0  ;;  %v1205_v33 = vpop.f32.mrb[11].mxu1  ;;  %v1210_v44 = vadd.f32 %v1203_v34, %v1000_v31 }
 0x528   :  { %v1209_v42 = vadd.f32 %v1134_v32, %v999_v24  ;;  %v1211_v45 = vadd.f32 %v1205_v33, %v1001_v52 }
 0x529   :  { %2780 = vtanh.f32 %v1208_v40 }
 0x52a   :  { %2782 = vtanh.f32 %v1209_v42 }
 0x52b   :  { %2784 = vtanh.f32 %v1210_v44 }
 0x52c   :  { %2786 = vtanh.f32 %v1211_v45 }
 0x533   :  { %v2781_v50 = vpop.eup %2780 }
 0x534   :  { %v1216_v55 = vmul.f32 0.5, %v2781_v50  ;;  %v2783_v4 = vpop.eup %2782 }
 0x535   :  { %v1218_v61 = vmul.f32 0.5, %v2783_v4  ;;  %v2785_v3 = vpop.eup %2784 }
 0x536   :  { %v1217_v56 = vadd.f32 0.5, %v1216_v55  ;;  %v2787_v10 = vpop.eup %2786 }
 0x537   :  { %v1219_v11 = vadd.f32 0.5, %v1218_v61  ;;  %v1220_v35 = vmul.f32 0.5, %v2787_v10 }
 0x538   :  { %v1223_v8 = vmul.f32 %v2785_v3, %v1217_v56 }
 0x539   :  { %v1222_v20 = vmul.f32 %v1219_v11, %v3392_v7  ;;  %v1221_v36 = vadd.f32 0.5, %v1220_v35  ;;  %v1462_v11 = vld [vmem:[#allocation3 + $0xc0] sm:$0xff] }
 0x53b   :  { %v3434_v26 = vadd.f32 %v1223_v8, %v1222_v20  ;;  %v1463_v8 = vld [vmem:[#allocation3 + $0xc8] sm:$0xff] }
 0x53d   :  { %2788 = vtanh.f32 %v3434_v26 }
 0x547   :  { %v2789_v13 = vpop.eup %2788 }
 0x548   :  { %v3437_v48 = vmul.f32 %v2789_v13, %v1221_v36 }
 0x54a   :  { %1363 = vmatmul.mubr.f32.vlgmr.msra.gmra.mrb[8].mxu0 %v3437_v48  ;;  %1434 = vmatmul.mubr.f32.vlgmr.msra.gmra.mrb[12].mxu1 %v3437_v48 }
 0x54b   :  { %2572 = vmatpush1.bf16.msra.mxu0 %v3311_v2  ;;  %2604 = vmatpush1.bf16.msra.mxu1 %v3314_v6 }
 0x54c   :  { %2574 = vmatprep.subr.bf16.mxu0 %v3319_v15  ;;  %2606 = vmatprep.subr.bf16.mxu1 %v3321_v58 }
 0x54d   :  { %1594 = vmatprep.mubr.f32.mxu0 %v2967_v0  ;;  %1665 = vmatprep.mubr.f32.mxu1 %v2967_v0 }
 0x54f   :  { %2576 = vmatpush1.bf16.msra.mxu0 %v3323_v63  ;;  %2608 = vmatpush1.bf16.msra.mxu1 %v3326_v18 }
 0x550   :  { %2578 = vmatprep.subr.bf16.mxu0 %v3331_v46  ;;  %2610 = vmatprep.subr.bf16.mxu1 %v3333_v19 }
 0x553   :  { %2580 = vmatpush1.bf16.msra.mxu0 %v3335_v22  ;;  %2612 = vmatpush1.bf16.msra.mxu1 %v3338_v29 }
 0x554   :  { %2582 = vmatprep.subr.bf16.mxu0 %v3343_v37  ;;  %2614 = vmatprep.subr.bf16.mxu1 %v3345_v38 }
 0x557   :  { %2584 = vmatpush1.bf16.msra.mxu0 %v3347_v39  ;;  %2616 = vmatpush1.bf16.msra.mxu1 %v3350_v47 }
 0x558   :  { %2586 = vmatprep.subr.bf16.mxu0 %v3355_v53  ;;  %2618 = vmatprep.subr.bf16.mxu1 %v3357_v59 }
 0x55b   :  { %2588 = vmatpush1.bf16.msra.mxu0 %v3276_v14  ;;  %2620 = vmatpush1.bf16.msra.mxu1 %v3359_v60  ;;  %v1230_v14 = vld [vmem:[#allocation3 + $0xa0] sm:$0xff] }
 0x55c   :  { %2590 = vmatprep.subr.bf16.mxu0 %v3279_v21  ;;  %2622 = vmatprep.subr.bf16.mxu1 %v3366_v5  ;;  %v1231_v21 = vld [vmem:[#allocation3 + $0xa8] sm:$0xff] }
 0x55f   :  { %2592 = vmatpush1.bf16.msra.mxu0 %v3281_v57  ;;  %2624 = vmatpush1.bf16.msra.mxu1 %v3368_v9 }
 0x560   :  { %2594 = vmatprep.subr.bf16.mxu0 %v3285_v1  ;;  %2626 = vmatprep.subr.bf16.mxu1 %v3374_v27  ;;  %v1232_v1 = vld [vmem:[#allocation3 + $0xb0] sm:$0xff] }
 0x563   :  { %2596 = vmatpush1.bf16.msra.mxu0 %v3287_v17  ;;  %2628 = vmatpush1.bf16.msra.mxu1 %v3376_v25 }
 0x564   :  { %2598 = vmatprep.subr.bf16.mxu0 %v3291_v28  ;;  %2630 = vmatprep.subr.bf16.mxu1 %v3382_v49 }
 0x567   :  { %2600 = vmatpush1.bf16.msra.mxu0 %v3293_v43  ;;  %2632 = vmatpush1.bf16.msra.mxu1 %v3384_v23  ;;  %v1233_v43 = vld [vmem:[#allocation3 + $0xb8] sm:$0xff] }
 0x568   :  { %2634 = vmatprep.subr.bf16.mxu0 %v3307_v51  ;;  %2666 = vmatprep.subr.bf16.mxu1 %v3309_v62 }
 0x61d   :  { %v1364_v57 = vpop.f32.mrb[8].mxu0  ;;  %v1435_v7 = vpop.f32.mrb[12].mxu1 }
 0x61e   :  { %v1440_v17 = vadd.f32 %v1364_v57, %v1230_v14  ;;  %v1366_v24 = vpop.f32.mrb[9].mxu0  ;;  %v1437_v30 = vpop.f32.mrb[13].mxu1  ;;  %v1442_v28 = vadd.f32 %v1435_v7, %v1232_v1  ;;  %v1465_v57 = vld [vmem:[#allocation3 + $0xd8] sm:$0xff] }
 0x61f   :  { %v1441_v31 = vadd.f32 %v1366_v24, %v1231_v21  ;;  %v1443_v34 = vadd.f32 %v1437_v30, %v1233_v43 }
 0x620   :  { %2790 = vtanh.f32 %v1440_v17 }
 0x621   :  { %2792 = vtanh.f32 %v1441_v31 }
 0x622   :  { %2794 = vtanh.f32 %v1442_v28 }
 0x623   :  { %2796 = vtanh.f32 %v1443_v34 }
 0x62a   :  { %v2791_v40 = vpop.eup %2790 }
 0x62b   :  { %v1448_v32 = vmul.f32 0.5, %v2791_v40  ;;  %v2793_v51 = vpop.eup %2792 }
 0x62c   :  { %v1450_v62 = vmul.f32 0.5, %v2793_v51  ;;  %v2795_v42 = vpop.eup %2794 }
 0x62d   :  { %v1449_v33 = vadd.f32 0.5, %v1448_v32  ;;  %v2797_v55 = vpop.eup %2796 }
 0x62e   :  { %v1451_v44 = vadd.f32 0.5, %v1450_v62  ;;  %v1452_v4 = vmul.f32 0.5, %v2797_v55  ;;  %v1937_v62 = vld [vmem:[#allocation8 + $0x10] sm:$0xff] }
 0x62f   :  { %v1455_v52 = vmul.f32 %v2795_v42, %v1449_v33  ;;  %v1938_v42 = vld [vmem:[#allocation8 + $0x18] sm:$0xff] }
 0x630   :  { %v1454_v45 = vmul.f32 %v1451_v44, %v3434_v26  ;;  %v1453_v56 = vadd.f32 0.5, %v1452_v4  ;;  %v1464_v26 = vld [vmem:[#allocation3 + $0xd0] sm:$0xff]  ;;  %v2701_v55 = vpack.c.bf16 %v1938_v42, %v1937_v62  ;;  %v1939_v4 = vld [vmem:[#allocation8 + $0x20] sm:$0xff] }
 0x632   :  { %v3476_v50 = vadd.f32 %v1455_v52, %v1454_v45 }
 0x634   :  { %2798 = vtanh.f32 %v3476_v50 }
 0x63e   :  { %v2799_v61 = vpop.eup %2798 }
 0x63f   :  { %v3479_v3 = vmul.f32 %v2799_v61, %v1453_v56  ;;  %v1940_v56 = vld [vmem:[#allocation8 + $0x28] sm:$0xff]  ;;  %v1941_v61 = vld [vmem:[#allocation8 + $0x30] sm:$0xff] }
 0x641   :  { %1595 = vmatmul.mubr.f32.vlgmr.msra.gmra.mrb[10].mxu0 %v3479_v3  ;;  %1666 = vmatmul.mubr.f32.vlgmr.msra.gmra.mrb[14].mxu1 %v3479_v3 }
 0x642   :  { %2636 = vmatpush1.bf16.msra.mxu0 %v3311_v2  ;;  %2668 = vmatpush1.bf16.msra.mxu1 %v3314_v6  ;;  %v1734_v2 = vld [vmem:[#allocation6 + $0x120] sm:$0xff] }
 0x643   :  { %2638 = vmatprep.subr.bf16.mxu0 %v3319_v15  ;;  %2670 = vmatprep.subr.bf16.mxu1 %v3321_v58  ;;  %v1739_v15 = vld [vmem:[#allocation6 + $0x148] sm:$0xff] }
 0x644   :  { %1826 = vmatprep.mubr.f32.mxu0 %v2967_v0  ;;  %1897 = vmatprep.mubr.f32.mxu1 %v2967_v0  ;;  %v1730_v0 = vld [vmem:[#allocation6 + $0x100] sm:$0xff]  ;;  %v1743_v58 = vld [vmem:[#allocation6 + $0x168] sm:$0xff] }
 0x645   :  { %v2651_v6 = vpack.c.bf16 %v1734_v2, %v1730_v0  ;;  %v1942_v0 = vld [vmem:[#allocation8 + $0x38] sm:$0xff] }
 0x646   :  { %2640 = vmatpush1.bf16.msra.mxu0 %v3323_v63  ;;  %2672 = vmatpush1.bf16.msra.mxu1 %v3326_v18  ;;  %v2653_v63 = vpack.c.bf16 %v1743_v58, %v1739_v15  ;;  %v1738_v18 = vld [vmem:[#allocation6 + $0x140] sm:$0xff]  ;;  %v2709_v2 = vpack.c.bf16 %v1942_v0, %v1941_v61  ;;  %v1944_v15 = vld [vmem:[#allocation8 + $0x48] sm:$0xff] }
 0x647   :  { %2642 = vmatprep.subr.bf16.mxu0 %v3331_v46  ;;  %2674 = vmatprep.subr.bf16.mxu1 %v3333_v19  ;;  %v1742_v46 = vld [vmem:[#allocation6 + $0x160] sm:$0xff] }
 0x648   :  { %v2655_v19 = vpack.c.bf16 %v1742_v46, %v1738_v18  ;;  %v1946_v18 = vld [vmem:[#allocation8 + $0x58] sm:$0xff] }
 0x64a   :  { %2644 = vmatpush1.bf16.msra.mxu0 %v3335_v22  ;;  %2676 = vmatpush1.bf16.msra.mxu1 %v3338_v29  ;;  %v1747_v22 = vld [vmem:[#allocation6 + $0x188] sm:$0xff] }
 0x64b   :  { %2646 = vmatprep.subr.bf16.mxu0 %v3343_v37  ;;  %2678 = vmatprep.subr.bf16.mxu1 %v3345_v38  ;;  %v1751_v29 = vld [vmem:[#allocation6 + $0x1a8] sm:$0xff]  ;;  %v1746_v38 = vld [vmem:[#allocation6 + $0x180] sm:$0xff] }
 0x64c   :  { %v2657_v37 = vpack.c.bf16 %v1751_v29, %v1747_v22  ;;  %v1948_v22 = vld [vmem:[#allocation8 + $0x68] sm:$0xff]  ;;  %v1949_v29 = vld [vmem:[#allocation8 + $0x70] sm:$0xff] }
 0x64e   :  { %2648 = vmatpush1.bf16.msra.mxu0 %v3347_v39  ;;  %2680 = vmatpush1.bf16.msra.mxu1 %v3350_v47  ;;  %v1750_v39 = vld [vmem:[#allocation6 + $0x1a0] sm:$0xff] }
 0x64f   :  { %2650 = vmatprep.subr.bf16.mxu0 %v3355_v53  ;;  %2682 = vmatprep.subr.bf16.mxu1 %v3357_v59  ;;  %v2659_v47 = vpack.c.bf16 %v1750_v39, %v1746_v38  ;;  %v1755_v53 = vld [vmem:[#allocation6 + $0x1c8] sm:$0xff]  ;;  %v1694_v39 = vld [vmem:[#allocation3 + $0xe0] sm:$0xff] }
 0x650   :  { %v1759_v59 = vld [vmem:[#allocation6 + $0x1e8] sm:$0xff] }
 0x652   :  { %2684 = vmatpush1.bf16.msra.mxu1 %v3359_v60  ;;  %2652 = vmatpush1.bf16.msra.mxu0 %v2651_v6  ;;  %v2661_v60 = vpack.c.bf16 %v1759_v59, %v1755_v53  ;;  %v1943_v6 = vld [vmem:[#allocation8 + $0x40] sm:$0xff]  ;;  %v1696_v59 = vld [vmem:[#allocation3 + $0xf0] sm:$0xff] }
 0x653   :  { %2686 = vmatprep.subr.bf16.mxu1 %v3366_v5  ;;  %2654 = vmatprep.subr.bf16.mxu0 %v2653_v63  ;;  %v1754_v5 = vld [vmem:[#allocation6 + $0x1c0] sm:$0xff]  ;;  %v2713_v58 = vpack.c.bf16 %v1944_v15, %v1943_v6  ;;  %v1945_v63 = vld [vmem:[#allocation8 + $0x50] sm:$0xff] }
 0x654   :  { %v2717_v46 = vpack.c.bf16 %v1946_v18, %v1945_v63 }
 0x656   :  { %2688 = vmatpush1.bf16.msra.mxu1 %v3368_v9  ;;  %2656 = vmatpush1.bf16.msra.mxu0 %v2655_v19  ;;  %v1758_v9 = vld [vmem:[#allocation6 + $0x1e0] sm:$0xff] }
 0x657   :  { %2690 = vmatprep.subr.bf16.mxu1 %v3374_v27  ;;  %2658 = vmatprep.subr.bf16.mxu0 %v2657_v37  ;;  %v2663_v27 = vpack.c.bf16 %v1758_v9, %v1754_v5  ;;  %v1947_v19 = vld [vmem:[#allocation8 + $0x60] sm:$0xff]  ;;  %v1950_v37 = vld [vmem:[#allocation8 + $0x78] sm:$0xff] }
 0x658   :  { %v2725_v38 = vpack.c.bf16 %v1950_v37, %v1949_v29 }
 0x65a   :  { %2692 = vmatpush1.bf16.msra.mxu1 %v3376_v25  ;;  %2660 = vmatpush1.bf16.msra.mxu0 %v2659_v47  ;;  %v1935_v25 = vld [vmem:[#allocation8] sm:$0xff]  ;;  %v1695_v47 = vld [vmem:[#allocation3 + $0xe8] sm:$0xff] }
 0x65b   :  { %2694 = vmatprep.subr.bf16.mxu1 %v3382_v49  ;;  %2662 = vmatprep.subr.bf16.mxu0 %v2661_v60  ;;  %v1936_v49 = vld [vmem:[#allocation8 + $0x8] sm:$0xff] }
 0x65e   :  { %2696 = vmatpush1.bf16.msra.mxu1 %v3384_v23  ;;  %2664 = vmatpush1.bf16.msra.mxu0 %v2663_v27  ;;  %v2697_v23 = vpack.c.bf16 %v1936_v49, %v1935_v25 }
 0x660   :  { %2698 = vmatprep.subr.bf16.mxu0 %v2697_v23 }
 0x714   :  { %v1596_v20 = vpop.f32.mrb[10].mxu0  ;;  %v1667_v10 = vpop.f32.mrb[14].mxu1 }
 0x715   :  { %v1672_v35 = vadd.f32 %v1596_v20, %v1462_v11  ;;  %v1598_v36 = vpop.f32.mrb[11].mxu0  ;;  %v1669_v13 = vpop.f32.mrb[15].mxu1  ;;  %v1674_v21 = vadd.f32 %v1667_v10, %v1464_v26 }
 0x716   :  { %v1673_v14 = vadd.f32 %v1598_v36, %v1463_v8  ;;  %v1675_v1 = vadd.f32 %v1669_v13, %v1465_v57 }
 0x717   :  { %2800 = vtanh.f32 %v1672_v35 }
 0x718   :  { %2802 = vtanh.f32 %v1673_v14  ;;  %v2116_v14 = vld [vmem:[%s3564_s3] ss:$0 sm:$0xff]  ;;  %s2968_s3 = smov [#allocation10]  }
 0x719   :  { %2804 = vtanh.f32 %v1674_v21  ;;  %s2089_s24 = sshll.u32 %s2968_s3, 4  ;;  %s2090_s24 = int_to_ptr.vmem [resolvable:$true] %s2089_s24 }
 0x71a   :  { %2806 = vtanh.f32 %v1675_v1  ;;  %s2886_s25 = scalar_lea.vmem %s2090_s24, 128  ;;  %p2891_p11 = scmp.lt.s32.totalorder %s2090_s24, %s2090_s24 }
 0x71b   :  { %p2887_p10 = scmp.ne.s32.totalorder %s2090_s24, %s2886_s25  ;;  %p2892_p12 = scmp.lt.s32.totalorder %s2886_s25, %s2886_s25 }
 0x71d   :  { %p2893_p13 = por %p2892_p12, %p2891_p11 }
 0x71f   :  { %p2894_p0 = pnand %p2893_p13, %p2887_p10 }
 0x721   :  { %v2801_v7 = vpop.eup %2800 }
 0x722   :  { %v1680_v17 = vmul.f32 0.5, %v2801_v7  ;;  %v2803_v24 = vpop.eup %2802 }
 0x723   :  { %v1682_v31 = vmul.f32 0.5, %v2803_v24  ;;  %v2805_v28 = vpop.eup %2804 }
 0x724   :  { %v1681_v30 = vadd.f32 0.5, %v1680_v17  ;;  %v2807_v51 = vpop.eup %2806 }
 0x725   :  { %v1683_v43 = vadd.f32 0.5, %v1682_v31  ;;  %v1684_v33 = vmul.f32 0.5, %v2807_v51 }
 0x726   :  { %v1687_v34 = vmul.f32 %v2805_v28, %v1681_v30 }
 0x727   :  { %v1686_v40 = vmul.f32 %v1683_v43, %v3476_v50  ;;  %v1685_v44 = vadd.f32 0.5, %v1684_v33  ;;  %v2705_v50 = vpack.c.bf16 %v1940_v56, %v1939_v4 }
 0x729   :  { %v3509_v32 = vadd.f32 %v1687_v34, %v1686_v40 }
 0x72b   :  { %2808 = vtanh.f32 %v3509_v32 }
 0x735   :  { %v2809_v52 = vpop.eup %2808 }
 0x736   :  { %v1690_v45 = vmul.f32 %v2809_v52, %v1685_v44 }
 0x738   :  { %1827 = vmatmul.mubr.f32.vlgmr.msra.gmra.mrb[12].mxu0 %v1690_v45  ;;  %1898 = vmatmul.mubr.f32.vlgmr.msra.gmra.mrb[16].mxu1 %v1690_v45 }
 0x739   :  { %2700 = vmatpush3.bf16.msra.mxu0 %v2697_v23  ;;  %2173 = vmatprep.mubr.f32.mxu0 %v3205_v41  ;;  %v2721_v41 = vpack.c.bf16 %v1948_v22, %v1947_v19 }
 0x73a   :  { %2702 = vmatprep.subr.bf16.mxu0 %v2701_v55 }
 0x73d   :  { %2704 = vmatpush3.bf16.msra.mxu0 %v2701_v55 }
 0x73e   :  { %2706 = vmatprep.subr.bf16.mxu0 %v2705_v50 }
 0x741   :  { %2708 = vmatpush3.bf16.msra.mxu0 %v2705_v50 }
 0x742   :  { %2710 = vmatprep.subr.bf16.mxu0 %v2709_v2 }
 0x745   :  { %2712 = vmatpush3.bf16.msra.mxu0 %v2709_v2 }
 0x746   :  { %2714 = vmatprep.subr.bf16.mxu0 %v2713_v58 }
 0x749   :  { %2716 = vmatpush3.bf16.msra.mxu0 %v2713_v58 }
 0x74a   :  { %2718 = vmatprep.subr.bf16.mxu0 %v2717_v46 }
 0x74d   :  { %2720 = vmatpush3.bf16.msra.mxu0 %v2717_v46 }
 0x74e   :  { %2722 = vmatprep.subr.bf16.mxu0 %v2721_v41 }
 0x751   :  { %2724 = vmatpush3.bf16.msra.mxu0 %v2721_v41 }
 0x752   :  { %2726 = vmatprep.subr.bf16.mxu0 %v2725_v38 }
 0x755   :  { %2728 = vmatpush3.bf16.msra.mxu0 %v2725_v38 }
 0x758   :  { %2174 = vmatmul.mubr.f32.vlgmr.msra.gmra.mrb[14].mxu0 %v3247_v12 }
 0x759   :  { %2176 = vmatprep.mubr.f32.mxu0 %v3301_v54  ;;  %v1697_v54 = vld [vmem:[#allocation3 + $0xf8] sm:$0xff] }
 0x75c   :  { %2177 = vmatmul.mubr.f32.gmra.mrb[16].mxu0 %v3395_v16 }
 0x75d   :  { %2179 = vmatprep.mubr.f32.mxu0 %v3437_v48 }
 0x760   :  { %2180 = vmatmul.mubr.f32.gmra.mrb[18].mxu0 %v3479_v3 }
 0x761   :  { %2182 = vmatprep.mubr.f32.mxu0 %v1690_v45 }
 0x80b   :  { %v1828_v53 = vpop.f32.mrb[12].mxu0  ;;  %v1899_v60 = vpop.f32.mrb[16].mxu1 }
 0x80c   :  { %v1904_v5 = vadd.f32 %v1828_v53, %v1694_v39  ;;  %v1830_v9 = vpop.f32.mrb[13].mxu0  ;;  %v1901_v27 = vpop.f32.mrb[17].mxu1  ;;  %v1906_v12 = vadd.f32 %v1899_v60, %v1696_v59 }
 0x80d   :  { %v1905_v25 = vadd.f32 %v1830_v9, %v1695_v47  ;;  %v1907_v16 = vadd.f32 %v1901_v27, %v1697_v54 }
 0x80e   :  { %2810 = vtanh.f32 %v1904_v5 }
 0x80f   :  { %2812 = vtanh.f32 %v1905_v25 }
 0x810   :  { %2814 = vtanh.f32 %v1906_v12 }
 0x811   :  { %2816 = vtanh.f32 %v1907_v16 }
 0x818   :  { %v2811_v49 = vpop.eup %2810 }
 0x819   :  { %v1912_v48 = vmul.f32 0.5, %v2811_v49  ;;  %v2813_v23 = vpop.eup %2812 }
 0x81a   :  { %v1914_v11 = vmul.f32 0.5, %v2813_v23  ;;  %v2815_v8 = vpop.eup %2814 }
 0x81b   :  { %v1913_v3 = vadd.f32 0.5, %v1912_v48  ;;  %v2817_v36 = vpop.eup %2816 }
 0x81c   :  { %v1915_v20 = vadd.f32 0.5, %v1914_v11  ;;  %v1916_v13 = vmul.f32 0.5, %v2817_v36 }
 0x81d   :  { %v1919_v26 = vmul.f32 %v2815_v8, %v1913_v3 }
 0x81e   :  { %v1918_v10 = vmul.f32 %v1915_v20, %v3509_v32  ;;  %v1917_v57 = vadd.f32 0.5, %v1916_v13 }
 0x820   :  { %v1920_v35 = vadd.f32 %v1919_v26, %v1918_v10 }
 0x822   :  { %2818 = vtanh.f32 %v1920_v35  ;;  %1926 = vst [vmem:[#allocation12] sm:$0xff] %v1920_v35 }
 0x82b   :  { %v2175_v21 = vpop.f32.mrb[14].mxu0 }
 0x82c   :  { %v2030_v1 = vadd.f32 %v2175_v21, %v2116_v14  ;;  %v2024_v7 = vpop.f32.mrb[15].mxu0  ;;  %v2819_v17 = vpop.eup %2818 }
 0x82d   :  { %v2025_v24 = vadd.f32 %v2116_v14, %v2024_v7  ;;  %v1922_v30 = vmul.f32 %v2819_v17, %v1917_v57 }
 0x82e   :  { %2064 = vst [vmem:[#allocation9 + $0x8] sm:$0xff] %v2030_v1 }
 0x82f   :  { %2063 = vst [vmem:[#allocation9] sm:$0xff] %v2025_v24  ;;  %v2178_v31 = vpop.f32.mrb[16].mxu0  ;;  %2183 = vmatmul.mubr.f32.gmra.mrb[20].mxu0 %v1922_v30  ;;  %1925 = vst [vmem:[#allocation10] sm:$0xff] %v1922_v30 }
 0x830   :  { %v2040_v28 = vadd.f32 %v2178_v31, %v2116_v14  ;;  %v2034_v43 = vpop.f32.mrb[17].mxu0 }
 0x831   :  { %v2035_v34 = vadd.f32 %v2116_v14, %v2034_v43 }
 0x832   :  { %2066 = vst [vmem:[#allocation9 + $0x18] sm:$0xff] %v2040_v28 }
 0x833   :  { %2065 = vst [vmem:[#allocation9 + $0x10] sm:$0xff] %v2035_v34  ;;  %v2181_v40 = vpop.f32.mrb[18].mxu0 }
 0x834   :  { %v2050_v32 = vadd.f32 %v2181_v40, %v2116_v14  ;;  %v2044_v51 = vpop.f32.mrb[19].mxu0 }
 0x835   :  { %v2045_v33 = vadd.f32 %v2116_v14, %v2044_v51 }
 0x836   :  { %2068 = vst [vmem:[#allocation9 + $0x28] sm:$0xff] %v2050_v32 }
 0x837   :  { %2067 = vst [vmem:[#allocation9 + $0x20] sm:$0xff] %v2045_v33 }
 0x838   :  { %2897 = shalt.err (!%p2894_p0)
}
 0x839   :  { %s2898_s29 = scalar_lea.hbm %s3568_s7, 128 }
 0x83a   :  { %p2899_p1 = scmp.ne.s32.totalorder %s3568_s7, %s2898_s29  ;;  %p2902_p2 = scmp.lt.u32.totalorder %s2898_s29, %s3568_s7 }
 0x83c   :  { %p2904_p3 = pnand %p2902_p2, %p2899_p1 }
 0x83e   :  { %2907 = shalt.err (!%p2904_p3)
}
 0x83f   :  { %2092 = dma.vmem_to_hbm [thread:$0]  %s2090_s24, 128, %s3568_s7, [#allocation11]  }
 0x840   :  { %s2969_s13 = smov [#allocation12]  }
 0x841   :  { %s2099_s14 = sshll.u32 %s2969_s13, 4  ;;  %s2100_s14 = int_to_ptr.vmem [resolvable:$true] %s2099_s14 }
 0x842   :  { %s2908_s15 = scalar_lea.vmem %s2100_s14, 128  ;;  %p2913_p5 = scmp.lt.s32.totalorder %s2100_s14, %s2100_s14 }
 0x843   :  { %p2909_p4 = scmp.ne.s32.totalorder %s2100_s14, %s2908_s15  ;;  %p2914_p6 = scmp.lt.s32.totalorder %s2908_s15, %s2908_s15 }
 0x845   :  { %p2915_p7 = por %p2914_p6, %p2913_p5 }
 0x847   :  { %p2916_p8 = pnand %p2915_p7, %p2909_p4 }
 0x849   :  { %2919 = shalt.err (!%p2916_p8)
}
 0x84a   :  { %s2920_s20 = scalar_lea.hbm %s3569_s8, 128 }
 0x84b   :  { %p2921_p9 = scmp.ne.s32.totalorder %s3569_s8, %s2920_s20  ;;  %p2924_p10 = scmp.lt.u32.totalorder %s2920_s20, %s3569_s8 }
 0x84d   :  { %p2926_p11 = pnand %p2924_p10, %p2921_p9 }
 0x84f   :  { %2929 = shalt.err (!%p2926_p11)
}
 0x850   :  { %2102 = dma.vmem_to_hbm [thread:$0]  %s2100_s14, 128, %s3569_s8, [#allocation11]  }
 0x851   :  { %s2970_s22 = smov [#allocation9]  }
 0x852   :  { %s2076_s5 = sshll.u32 %s2970_s22, 4  ;;  %s2077_s5 = int_to_ptr.vmem [resolvable:$true] %s2076_s5 }
 0x853   :  { %s2930_s23 = scalar_lea.vmem %s2077_s5, 1024  ;;  %p2935_p13 = scmp.lt.s32.totalorder %s2077_s5, %s2077_s5 }
 0x854   :  { %p2931_p12 = scmp.ne.s32.totalorder %s2077_s5, %s2930_s23  ;;  %p2936_p0 = scmp.lt.s32.totalorder %s2930_s23, %s2930_s23 }
 0x856   :  { %p2937_p1 = por %p2936_p0, %p2935_p13 }
 0x858   :  { %p2938_p2 = pnand %p2937_p1, %p2931_p12 }
 0x902   :  { %v2184_v62 = vpop.f32.mrb[20].mxu0 }
 0x903   :  { %v2060_v42 = vadd.f32 %v2184_v62, %v2116_v14  ;;  %v2054_v44 = vpop.f32.mrb[21].mxu0 }
 0x904   :  { %v2055_v52 = vadd.f32 %v2116_v14, %v2054_v44 }
 0x905   :  { %2070 = vst [vmem:[#allocation9 + $0x38] sm:$0xff] %v2060_v42 }
 0x906   :  { %2069 = vst [vmem:[#allocation9 + $0x30] sm:$0xff] %v2055_v52 }
 0x907   :  { %2941 = shalt.err (!%p2938_p2)
}
 0x908   :  { %s2942_s8 = scalar_lea.hbm %s3567_s6, 1024 }
 0x909   :  { %p2943_p3 = scmp.ne.s32.totalorder %s3567_s6, %s2942_s8  ;;  %p2946_p4 = scmp.lt.u32.totalorder %s2942_s8, %s3567_s6 }
 0x90b   :  { %p2948_p5 = pnand %p2946_p4, %p2943_p3 }
 0x90d   :  { %2951 = shalt.err (!%p2948_p5)
}
 0x90e   :  { %2082 = dma.vmem_to_hbm [thread:$0]  %s2077_s5, 1024, %s3567_s6, [#allocation5], %s2965_s0, %s2965_s0, %s2966_s30  }
 0x90f   :  { %2956 = dma.done.wait [#allocation5], 1024  }
 0x910   :  { %2957 = vsyncadd [#allocation5], 4294966272 }
 0x911   :  { %2958 = dma.done.wait [#allocation11], 256  }
 0x912   :  { %2959 = vsyncadd [#allocation11], 4294967040 }
 0x913   :  { %2112 = vsyncpa [#allocation4], 1 }
 0x914   :  { %2113 = vsyncpa [#allocation7], 1 }
 0x915   :  { %2114 = vsyncpa [#allocation5], 1 }
 0x916   :  { %2115 = vsyncpa [#allocation11], 1 }

</bundles_post_ra>
